<compile_context>
chip_gen: v7x
topology: tpu7x:2x2x1
jax: 0.10.0
libtpu: 0.0.40
codegen_flags: <defaults>
</compile_context>

<pallas_src>
import functools

import jax
import jax.numpy as jnp
from jax.experimental import pallas as pl
from jax.experimental.pallas import tpu as pltpu


def _ggnn_kernel(n_steps,
                 A_ref, AT_ref, state_ref, ann_ref,
                 w_io_ref, b_io_ref, w_gin_ref, w_gout_ref,
                 w_hrz_ref, w_ht_ref, b_rz_ref, b_t_ref,
                 w_o1s_ref, w_o1a_ref, b_o1_ref, w_o2_ref, b_o2_ref,
                 out_ref):
    bf16 = jnp.bfloat16
    f32 = jnp.float32
    Bb, n, _ = A_ref.shape
    M, d = out_ref.shape            # M == Bb * n

    A = A_ref[...]                  # (Bb, n, n)  bf16
    AT = AT_ref[...]                # (Bb, n, n)  bf16 (pre-transposed, loop-invariant)
    h = state_ref[...]              # (M, d)      f32 carried state
    ann = ann_ref[...]              # (M, a)      bf16

    # Weights read once (already bf16 from the wrapper).
    w_io, w_gin, w_gout = w_io_ref[...], w_gin_ref[...], w_gout_ref[...]
    w_hrz, w_ht = w_hrz_ref[...], w_ht_ref[...]

    # Biases: read + broadcast once, outside the unrolled step loop.
    b_io = jnp.broadcast_to(b_io_ref[...], (M, 2 * d))
    b_rz = jnp.broadcast_to(b_rz_ref[...], (M, 2 * d))
    b_t = jnp.broadcast_to(b_t_ref[...], (M, d))

    def mm(x, w):                   # bf16 x bf16 MXU matmul, f32 accumulate
        return jnp.dot(x, w, preferred_element_type=f32)

    def bmm(adj, x):                # batched adjacency product
        return jnp.einsum('bij,bjd->bid', adj, x, preferred_element_type=f32)

    # n_steps applications of Propogator.forward (GRU-style gating).
    for _ in range(n_steps):
        hb = h.astype(bf16)
        # in_fc / out_fc fused:  s = [h @ W_in + b_in | h @ W_out + b_out]
        s = mm(hb, w_io) + b_io                            # (M, 2d) f32
        s_in = s[:, :d].reshape(Bb, n, d).astype(bf16)
        s_out = s[:, d:].reshape(Bb, n, d).astype(bf16)
        a_in = bmm(A, s_in).reshape(M, d)                  # (M, d) f32
        a_out = bmm(AT, s_out).reshape(M, d)
        # gate pre-activations, fused across r | z | t on the lane axis
        pre = (mm(a_in.astype(bf16), w_gin)
               + mm(a_out.astype(bf16), w_gout))           # (M, 3d) f32
        rz = jax.nn.sigmoid(pre[:, :2 * d] + mm(hb, w_hrz) + b_rz)
        r = rz[:, :d]
        z = rz[:, d:]
        h_hat = jnp.tanh(pre[:, 2 * d:]
                         + mm((r * h).astype(bf16), w_ht) + b_t)
        h = (1.0 - z) * h + z * h_hat                      # blend in f32

    # Output head: Linear(d + a -> d) -> tanh -> Linear(d -> d)
    o1 = jnp.tanh(mm(h.astype(bf16), w_o1s_ref[...])
                  + mm(ann, w_o1a_ref[...]) + b_o1_ref[...])
    out_ref[...] = mm(o1.astype(bf16), w_o2_ref[...]) + b_o2_ref[...]


def ggnn_based_layer(prop_state, annotation, A, params, *, n_steps,
                     batch_block=None):
    """prop_state: (B, n, d), annotation: (B, n, a), A: (B, n, n) float32."""
    B, n, d = prop_state.shape
    a = annotation.shape[-1]
    if batch_block is None:
        batch_block = B if B <= 2 else B // 2   # keep grid >= 2 (v7x megacore)
    Bb = batch_block
    assert B % Bb == 0, "batch_block must divide the batch size"
    bf16 = jnp.bfloat16
    M = Bb * n

    # ---- wrapper-side column-wise weight fusion + bf16 casts ---------------
    w_io = jnp.concatenate([params["w_in"], params["w_out"]], axis=1).astype(bf16)
    b_io = jnp.concatenate([params["b_in"], params["b_out"]], axis=1)
    w_gin = jnp.concatenate(
        [params["w_r"][0], params["w_z"][0], params["w_t"][0]], axis=1).astype(bf16)
    w_gout = jnp.concatenate(
        [params["w_r"][1], params["w_z"][1], params["w_t"][1]], axis=1).astype(bf16)
    w_hrz = jnp.concatenate([params["w_r"][2], params["w_z"][2]], axis=1).astype(bf16)
    w_ht = params["w_t"][2].astype(bf16)
    b_rz = jnp.concatenate([params["b_r"], params["b_z"]], axis=1)
    b_t = params["b_t"]
    w_o1s = params["w_o1s"].astype(bf16)
    w_o1a = params["w_o1a"].astype(bf16)
    b_o1 = params["b_o1"]
    w_o2 = params["w_o2"].astype(bf16)
    b_o2 = params["b_o2"]

    # ---- inputs: pre-transposed A, bf16 MXU operands, flattened states -----
    A_bf = A.astype(bf16)
    AT_bf = jnp.swapaxes(A, 1, 2).astype(bf16)     # hoisted out of the step loop
    h0 = prop_state.reshape(B * n, d)              # f32 carried state
    ann_bf = annotation.reshape(B * n, a).astype(bf16)

    def per_batch3(shape):
        return pl.BlockSpec((Bb,) + shape, lambda b: (b, 0, 0))

    def per_rows(cols):
        return pl.BlockSpec((M, cols), lambda b: (b, 0))

    def whole(shape):
        return pl.BlockSpec(shape, lambda b: (0,) * len(shape))

    in_specs = [
        per_batch3((n, n)),                       # A
        per_batch3((n, n)),                       # A^T
        per_rows(d),                              # prop_state (flattened)
        per_rows(a),                              # annotation (flattened)
        whole((d, 2 * d)), whole((1, 2 * d)),     # w_io, b_io
        whole((d, 3 * d)), whole((d, 3 * d)),     # w_gin, w_gout
        whole((d, 2 * d)), whole((d, d)),         # w_hrz, w_ht
        whole((1, 2 * d)), whole((1, d)),         # b_rz, b_t
        whole((d, d)), whole((a, d)), whole((1, d)),   # output linear 1 (split)
        whole((d, d)), whole((1, d)),             # output linear 2
    ]
    out_spec = per_rows(d)

    out_flat = pl.pallas_call(
        functools.partial(_ggnn_kernel, n_steps),
        out_shape=jax.ShapeDtypeStruct((B * n, d), jnp.float32),
        grid_spec=pltpu.PrefetchScalarGridSpec(
            num_scalar_prefetch=0,
            grid=(B // Bb,),
            in_specs=in_specs,
            out_specs=out_spec,
        ),
        compiler_params=pltpu.CompilerParams(
            dimension_semantics=("parallel",)),
    )(A_bf, AT_bf, h0, ann_bf,
      w_io, b_io, w_gin, w_gout, w_hrz, w_ht, b_rz, b_t,
      w_o1s, w_o1a, b_o1, w_o2, b_o2)

    output = out_flat.reshape(B, n * d)   # contiguous; matches .view(-1, n*d)
    hidden_state = output
    return output, hidden_state


def init_params(key, state_dim, annotation_dim):
    """Deterministic init mirroring _initialize_weights: N(0, 0.02), bias=0.
    Weights are stored already transposed (in_features, out_features)."""
    d, a = state_dim, annotation_dim
    ks = jax.random.split(key, 8)
    std = 0.02

    def w(k, shape):
        return (std * jax.random.normal(k, shape)).astype(jnp.float32)

    def b(cols):
        return jnp.zeros((1, cols), jnp.float32)

    return {
        "w_in": w(ks[0], (d, d)), "b_in": b(d),
        "w_out": w(ks[1], (d, d)), "b_out": b(d),
        # gate weights: (3, d, d) == W^T of Linear(3d, d) split into 3 row-blocks
        # (a_in part, a_out part, state_cur part)
        "w_r": w(ks[2], (3, d, d)), "b_r": b(d),
        "w_z": w(ks[3], (3, d, d)), "b_z": b(d),
        "w_t": w(ks[4], (3, d, d)), "b_t": b(d),
        # output layer 1: W^T of Linear(d + a, d) split into state / annotation parts
        "w_o1s": w(ks[5], (d, d)), "w_o1a": w(ks[6], (a, d)), "b_o1": b(d),
        "w_o2": w(ks[7], (d, d)), "b_o2": b(d),
    }


def propogator_ref(state_in, state_out, state_cur, A, w_r, b_r, w_z, b_z, w_t, b_t):
    """Pure-JAX replica of Propogator.forward (the PyTorch spec)."""
    dot = functools.partial(jnp.matmul, precision=jax.lax.Precision.HIGHEST)
    a_in = dot(A, state_in)
    a_out = dot(jnp.swapaxes(A, 1, 2), state_out)
    a_cat = jnp.concatenate([a_in, a_out, state_cur], -1)
    r = jax.nn.sigmoid(dot(a_cat, w_r) + b_r)
    z = jax.nn.sigmoid(dot(a_cat, w_z) + b_z)
    joined = jnp.concatenate([a_in, a_out, r * state_cur], -1)
    h_hat = jnp.tanh(dot(joined, w_t) + b_t)
    return (1.0 - z) * state_cur + z * h_hat


def ggnn_reference(prop_state, annotation, A, params, *, n_steps):
    """f32 reference reproducing the PyTorch forward (n_edge_types == 1)."""
    h = prop_state
    w_r = jnp.concatenate([params["w_r"][0], params["w_r"][1], params["w_r"][2]], 0)
    w_z = jnp.concatenate([params["w_z"][0], params["w_z"][1], params["w_z"][2]], 0)
    w_t = jnp.concatenate([params["w_t"][0], params["w_t"][1], params["w_t"][2]], 0)
    w_o1 = jnp.concatenate([params["w_o1s"], params["w_o1a"]], 0)
    dot = functools.partial(jnp.matmul, precision=jax.lax.Precision.HIGHEST)
    for _ in range(n_steps):
        s_in = dot(h, params["w_in"]) + params["b_in"]
        s_out = dot(h, params["w_out"]) + params["b_out"]
        h = propogator_ref(s_in, s_out, h, A,
                           w_r, params["b_r"], w_z, params["b_z"],
                           w_t, params["b_t"])
    joined_state = jnp.concatenate([h, annotation], -1)
    out = dot(jnp.tanh(dot(joined_state, w_o1) + params["b_o1"]),
              params["w_o2"]) + params["b_o2"]
    out = out.reshape(out.shape[0], -1)
    return out, out


if __name__ == "__main__":
    # Small, module-consistent shapes (n_edge_types must be 1; see header note).
    # B = 8 with batch_block = 4 gives a grid of 2 (even -> both v7x TCs busy).
    B, n_node, state_dim, annotation_dim, n_steps = 8, 16, 32, 8, 3

    key = jax.random.PRNGKey(0)
    k_p, k_s, k_a, k_adj = jax.random.split(key, 4)
    params = init_params(k_p, state_dim, annotation_dim)

    prop_state = jax.random.normal(k_s, (B, n_node, state_dim), jnp.float32)
    annotation = jax.random.normal(k_a, (B, n_node, annotation_dim), jnp.float32)
    # Sparse-ish 0/1 adjacency like a GGNN graph.
    A = (jax.random.uniform(k_adj, (B, n_node, n_node)) < 0.25).astype(jnp.float32)

    output, hidden_state = ggnn_based_layer(
        prop_state, annotation, A, params, n_steps=n_steps, batch_block=4)
    output = jax.block_until_ready(output)

    ref_out, _ = ggnn_reference(prop_state, annotation, A, params, n_steps=n_steps)
    assert output.shape == (B, n_node * state_dim)
    max_err = float(jnp.max(jnp.abs(output - ref_out)))
    # bf16 MXU inputs with f32 accumulation: re-validated against the f32 reference.
    assert jnp.allclose(output, ref_out, atol=3e-3, rtol=2e-2), max_err

    print("KERNEL_OK")
</pallas_src>

<mosaic_0001>
module attributes {stable_mosaic.version = 11 : i64} {
  func.func @_ggnn_kernel(%arg0: i32, %arg1: memref<4x16x16xbf16, #tpu.memory_space<vmem>>, %arg2: memref<4x16x16xbf16, #tpu.memory_space<vmem>>, %arg3: memref<64x32xf32, #tpu.memory_space<vmem>>, %arg4: memref<64x8xbf16, #tpu.memory_space<vmem>>, %arg5: memref<32x64xbf16, #tpu.memory_space<vmem>>, %arg6: memref<1x64xf32, #tpu.memory_space<vmem>>, %arg7: memref<32x96xbf16, #tpu.memory_space<vmem>>, %arg8: memref<32x96xbf16, #tpu.memory_space<vmem>>, %arg9: memref<32x64xbf16, #tpu.memory_space<vmem>>, %arg10: memref<32x32xbf16, #tpu.memory_space<vmem>>, %arg11: memref<1x64xf32, #tpu.memory_space<vmem>>, %arg12: memref<1x32xf32, #tpu.memory_space<vmem>>, %arg13: memref<32x32xbf16, #tpu.memory_space<vmem>>, %arg14: memref<8x32xbf16, #tpu.memory_space<vmem>>, %arg15: memref<1x32xf32, #tpu.memory_space<vmem>>, %arg16: memref<32x32xbf16, #tpu.memory_space<vmem>>, %arg17: memref<1x32xf32, #tpu.memory_space<vmem>>, %arg18: memref<64x32xf32, #tpu.memory_space<vmem>>) attributes {dimension_semantics = [#tpu.dimension_semantics<parallel>], iteration_bounds = array<i64: 2>, scalar_prefetch = 0 : i64, scratch_operands = 0 : i64, tpu.core_type = #tpu.core_type<tc>, window_params = [{transform_indices = @transform_0, window_bounds = array<i64: 4, 16, 16>}, {transform_indices = @transform_1, window_bounds = array<i64: 4, 16, 16>}, {transform_indices = @transform_2, window_bounds = array<i64: 64, 32>}, {transform_indices = @transform_3, window_bounds = array<i64: 64, 8>}, {pipeline_mode = #tpu.pipeline_mode<synchronous>, transform_indices = @transform_4, window_bounds = array<i64: 32, 64>}, {pipeline_mode = #tpu.pipeline_mode<synchronous>, transform_indices = @transform_5, window_bounds = array<i64: 1, 64>}, {pipeline_mode = #tpu.pipeline_mode<synchronous>, transform_indices = @transform_6, window_bounds = array<i64: 32, 96>}, {pipeline_mode = #tpu.pipeline_mode<synchronous>, transform_indices = @transform_7, window_bounds = array<i64: 32, 96>}, {pipeline_mode = #tpu.pipeline_mode<synchronous>, transform_indices = @transform_8, window_bounds = array<i64: 32, 64>}, {pipeline_mode = #tpu.pipeline_mode<synchronous>, transform_indices = @transform_9, window_bounds = array<i64: 32, 32>}, {pipeline_mode = #tpu.pipeline_mode<synchronous>, transform_indices = @transform_10, window_bounds = array<i64: 1, 64>}, {pipeline_mode = #tpu.pipeline_mode<synchronous>, transform_indices = @transform_11, window_bounds = array<i64: 1, 32>}, {pipeline_mode = #tpu.pipeline_mode<synchronous>, transform_indices = @transform_12, window_bounds = array<i64: 32, 32>}, {pipeline_mode = #tpu.pipeline_mode<synchronous>, transform_indices = @transform_13, window_bounds = array<i64: 8, 32>}, {pipeline_mode = #tpu.pipeline_mode<synchronous>, transform_indices = @transform_14, window_bounds = array<i64: 1, 32>}, {pipeline_mode = #tpu.pipeline_mode<synchronous>, transform_indices = @transform_15, window_bounds = array<i64: 32, 32>}, {pipeline_mode = #tpu.pipeline_mode<synchronous>, transform_indices = @transform_16, window_bounds = array<i64: 1, 32>}, {transform_indices = @transform_17, window_bounds = array<i64: 64, 32>}]} {
    %c0 = arith.constant 0 : index
    %c0_0 = arith.constant 0 : index
    %c0_1 = arith.constant 0 : index
    %0 = vector.load %arg1[%c0, %c0_0, %c0_1] : memref<4x16x16xbf16, #tpu.memory_space<vmem>>, vector<4x16x16xbf16>
    %c0_2 = arith.constant 0 : index
    %c0_3 = arith.constant 0 : index
    %c0_4 = arith.constant 0 : index
    %1 = vector.load %arg2[%c0_2, %c0_3, %c0_4] : memref<4x16x16xbf16, #tpu.memory_space<vmem>>, vector<4x16x16xbf16>
    %c0_5 = arith.constant 0 : index
    %c0_6 = arith.constant 0 : index
    %2 = vector.load %arg3[%c0_5, %c0_6] : memref<64x32xf32, #tpu.memory_space<vmem>>, vector<64x32xf32>
    %c0_7 = arith.constant 0 : index
    %c0_8 = arith.constant 0 : index
    %3 = vector.load %arg4[%c0_7, %c0_8] : memref<64x8xbf16, #tpu.memory_space<vmem>>, vector<64x8xbf16>
    %c0_9 = arith.constant 0 : index
    %c0_10 = arith.constant 0 : index
    %4 = vector.load %arg5[%c0_9, %c0_10] : memref<32x64xbf16, #tpu.memory_space<vmem>>, vector<32x64xbf16>
    %c0_11 = arith.constant 0 : index
    %c0_12 = arith.constant 0 : index
    %5 = vector.load %arg7[%c0_11, %c0_12] : memref<32x96xbf16, #tpu.memory_space<vmem>>, vector<32x96xbf16>
    %c0_13 = arith.constant 0 : index
    %c0_14 = arith.constant 0 : index
    %6 = vector.load %arg8[%c0_13, %c0_14] : memref<32x96xbf16, #tpu.memory_space<vmem>>, vector<32x96xbf16>
    %c0_15 = arith.constant 0 : index
    %c0_16 = arith.constant 0 : index
    %7 = vector.load %arg9[%c0_15, %c0_16] : memref<32x64xbf16, #tpu.memory_space<vmem>>, vector<32x64xbf16>
    %c0_17 = arith.constant 0 : index
    %c0_18 = arith.constant 0 : index
    %8 = vector.load %arg10[%c0_17, %c0_18] : memref<32x32xbf16, #tpu.memory_space<vmem>>, vector<32x32xbf16>
    %c0_19 = arith.constant 0 : index
    %c0_20 = arith.constant 0 : index
    %9 = vector.load %arg6[%c0_19, %c0_20] : memref<1x64xf32, #tpu.memory_space<vmem>>, vector<1x64xf32>
    %10 = vector.shape_cast %9 : vector<1x64xf32> to vector<1x64xf32>
    %11 = vector.broadcast %10 : vector<1x64xf32> to vector<64x64xf32>
    %c0_21 = arith.constant 0 : index
    %c0_22 = arith.constant 0 : index
    %12 = vector.load %arg11[%c0_21, %c0_22] : memref<1x64xf32, #tpu.memory_space<vmem>>, vector<1x64xf32>
    %13 = vector.shape_cast %12 : vector<1x64xf32> to vector<1x64xf32>
    %14 = vector.broadcast %13 : vector<1x64xf32> to vector<64x64xf32>
    %c0_23 = arith.constant 0 : index
    %c0_24 = arith.constant 0 : index
    %15 = vector.load %arg12[%c0_23, %c0_24] : memref<1x32xf32, #tpu.memory_space<vmem>>, vector<1x32xf32>
    %16 = vector.shape_cast %15 : vector<1x32xf32> to vector<1x32xf32>
    %17 = vector.broadcast %16 : vector<1x32xf32> to vector<64x32xf32>
    %18 = arith.truncf %2 : vector<64x32xf32> to vector<64x32xbf16>
    %cst = arith.constant dense<0.000000e+00> : vector<64x64xf32>
    %19 = tpu.matmul %18, %4, %cst {dimension_numbers = #tpu.dot_dimension_numbers<[1], [0], [0], [1], [0, 0, 1, 1], [], []>} : vector<64x32xbf16>, vector<32x64xbf16>, vector<64x64xf32> -> vector<64x64xf32>
    %20 = arith.addf %19, %11 : vector<64x64xf32>
    %21 = vector.extract_strided_slice %20 {offsets = [0, 0], sizes = [64, 32], strides = [1, 1]} : vector<64x64xf32> to vector<64x32xf32>
    %22 = vector.shape_cast %21 : vector<64x32xf32> to vector<4x16x32xf32>
    %23 = arith.truncf %22 : vector<4x16x32xf32> to vector<4x16x32xbf16>
    %24 = vector.extract_strided_slice %20 {offsets = [0, 32], sizes = [64, 32], strides = [1, 1]} : vector<64x64xf32> to vector<64x32xf32>
    %25 = vector.shape_cast %24 : vector<64x32xf32> to vector<4x16x32xf32>
    %26 = arith.truncf %25 : vector<4x16x32xf32> to vector<4x16x32xbf16>
    "tpu.trace_start"() <{level = 10 : i32, message = "bij,bjd->bid"}> : () -> ()
    %cst_25 = arith.constant dense<0.000000e+00> : vector<4x16x32xf32>
    %27 = tpu.matmul %0, %23, %cst_25 {dimension_numbers = #tpu.dot_dimension_numbers<[2], [1], [1], [2], [0, 0, 0, 1, 1, 2], [0], [0]>} : vector<4x16x16xbf16>, vector<4x16x32xbf16>, vector<4x16x32xf32> -> vector<4x16x32xf32>
    "tpu.trace_stop"() : () -> ()
    %28 = vector.shape_cast %27 : vector<4x16x32xf32> to vector<64x32xf32>
    "tpu.trace_start"() <{level = 10 : i32, message = "bij,bjd->bid"}> : () -> ()
    %cst_26 = arith.constant dense<0.000000e+00> : vector<4x16x32xf32>
    %29 = tpu.matmul %1, %26, %cst_26 {dimension_numbers = #tpu.dot_dimension_numbers<[2], [1], [1], [2], [0, 0, 0, 1, 1, 2], [0], [0]>} : vector<4x16x16xbf16>, vector<4x16x32xbf16>, vector<4x16x32xf32> -> vector<4x16x32xf32>
    "tpu.trace_stop"() : () -> ()
    %30 = vector.shape_cast %29 : vector<4x16x32xf32> to vector<64x32xf32>
    %31 = arith.truncf %28 : vector<64x32xf32> to vector<64x32xbf16>
    %cst_27 = arith.constant dense<0.000000e+00> : vector<64x96xf32>
    %32 = tpu.matmul %31, %5, %cst_27 {dimension_numbers = #tpu.dot_dimension_numbers<[1], [0], [0], [1], [0, 0, 1, 1], [], []>} : vector<64x32xbf16>, vector<32x96xbf16>, vector<64x96xf32> -> vector<64x96xf32>
    %33 = arith.truncf %30 : vector<64x32xf32> to vector<64x32xbf16>
    %cst_28 = arith.constant dense<0.000000e+00> : vector<64x96xf32>
    %34 = tpu.matmul %33, %6, %cst_28 {dimension_numbers = #tpu.dot_dimension_numbers<[1], [0], [0], [1], [0, 0, 1, 1], [], []>} : vector<64x32xbf16>, vector<32x96xbf16>, vector<64x96xf32> -> vector<64x96xf32>
    %35 = arith.addf %32, %34 : vector<64x96xf32>
    %36 = vector.extract_strided_slice %35 {offsets = [0, 0], sizes = [64, 64], strides = [1, 1]} : vector<64x96xf32> to vector<64x64xf32>
    %cst_29 = arith.constant dense<0.000000e+00> : vector<64x64xf32>
    %37 = tpu.matmul %18, %7, %cst_29 {dimension_numbers = #tpu.dot_dimension_numbers<[1], [0], [0], [1], [0, 0, 1, 1], [], []>} : vector<64x32xbf16>, vector<32x64xbf16>, vector<64x64xf32> -> vector<64x64xf32>
    %38 = arith.addf %36, %37 : vector<64x64xf32>
    %39 = arith.addf %38, %14 : vector<64x64xf32>
    %40 = arith.negf %39 : vector<64x64xf32>
    %41 = math.exp %40 : vector<64x64xf32>
    %cst_30 = arith.constant 1.000000e+00 : f32
    %42 = vector.broadcast %cst_30 : f32 to vector<64x64xf32>
    %43 = arith.addf %42, %41 : vector<64x64xf32>
    %44 = arith.divf %42, %43 : vector<64x64xf32>
    %45 = vector.extract_strided_slice %44 {offsets = [0, 0], sizes = [64, 32], strides = [1, 1]} : vector<64x64xf32> to vector<64x32xf32>
    %46 = vector.extract_strided_slice %44 {offsets = [0, 32], sizes = [64, 32], strides = [1, 1]} : vector<64x64xf32> to vector<64x32xf32>
    %47 = vector.extract_strided_slice %35 {offsets = [0, 64], sizes = [64, 32], strides = [1, 1]} : vector<64x96xf32> to vector<64x32xf32>
    %48 = arith.mulf %45, %2 : vector<64x32xf32>
    %49 = arith.truncf %48 : vector<64x32xf32> to vector<64x32xbf16>
    %cst_31 = arith.constant dense<0.000000e+00> : vector<64x32xf32>
    %50 = tpu.matmul %49, %8, %cst_31 {dimension_numbers = #tpu.dot_dimension_numbers<[1], [0], [0], [1], [0, 0, 1, 1], [], []>} : vector<64x32xbf16>, vector<32x32xbf16>, vector<64x32xf32> -> vector<64x32xf32>
    %51 = arith.addf %47, %50 : vector<64x32xf32>
    %52 = arith.addf %51, %17 : vector<64x32xf32>
    %53 = math.tanh %52 : vector<64x32xf32>
    %cst_32 = arith.constant 1.000000e+00 : f32
    %54 = vector.broadcast %cst_32 : f32 to vector<64x32xf32>
    %55 = arith.subf %54, %46 : vector<64x32xf32>
    %56 = arith.mulf %55, %2 : vector<64x32xf32>
    %57 = arith.mulf %46, %53 : vector<64x32xf32>
    %58 = arith.addf %56, %57 : vector<64x32xf32>
    %59 = arith.truncf %58 : vector<64x32xf32> to vector<64x32xbf16>
    %cst_33 = arith.constant dense<0.000000e+00> : vector<64x64xf32>
    %60 = tpu.matmul %59, %4, %cst_33 {dimension_numbers = #tpu.dot_dimension_numbers<[1], [0], [0], [1], [0, 0, 1, 1], [], []>} : vector<64x32xbf16>, vector<32x64xbf16>, vector<64x64xf32> -> vector<64x64xf32>
    %61 = arith.addf %60, %11 : vector<64x64xf32>
    %62 = vector.extract_strided_slice %61 {offsets = [0, 0], sizes = [64, 32], strides = [1, 1]} : vector<64x64xf32> to vector<64x32xf32>
    %63 = vector.shape_cast %62 : vector<64x32xf32> to vector<4x16x32xf32>
    %64 = arith.truncf %63 : vector<4x16x32xf32> to vector<4x16x32xbf16>
    %65 = vector.extract_strided_slice %61 {offsets = [0, 32], sizes = [64, 32], strides = [1, 1]} : vector<64x64xf32> to vector<64x32xf32>
    %66 = vector.shape_cast %65 : vector<64x32xf32> to vector<4x16x32xf32>
    %67 = arith.truncf %66 : vector<4x16x32xf32> to vector<4x16x32xbf16>
    "tpu.trace_start"() <{level = 10 : i32, message = "bij,bjd->bid"}> : () -> ()
    %cst_34 = arith.constant dense<0.000000e+00> : vector<4x16x32xf32>
    %68 = tpu.matmul %0, %64, %cst_34 {dimension_numbers = #tpu.dot_dimension_numbers<[2], [1], [1], [2], [0, 0, 0, 1, 1, 2], [0], [0]>} : vector<4x16x16xbf16>, vector<4x16x32xbf16>, vector<4x16x32xf32> -> vector<4x16x32xf32>
    "tpu.trace_stop"() : () -> ()
    %69 = vector.shape_cast %68 : vector<4x16x32xf32> to vector<64x32xf32>
    "tpu.trace_start"() <{level = 10 : i32, message = "bij,bjd->bid"}> : () -> ()
    %cst_35 = arith.constant dense<0.000000e+00> : vector<4x16x32xf32>
    %70 = tpu.matmul %1, %67, %cst_35 {dimension_numbers = #tpu.dot_dimension_numbers<[2], [1], [1], [2], [0, 0, 0, 1, 1, 2], [0], [0]>} : vector<4x16x16xbf16>, vector<4x16x32xbf16>, vector<4x16x32xf32> -> vector<4x16x32xf32>
    "tpu.trace_stop"() : () -> ()
    %71 = vector.shape_cast %70 : vector<4x16x32xf32> to vector<64x32xf32>
    %72 = arith.truncf %69 : vector<64x32xf32> to vector<64x32xbf16>
    %cst_36 = arith.constant dense<0.000000e+00> : vector<64x96xf32>
    %73 = tpu.matmul %72, %5, %cst_36 {dimension_numbers = #tpu.dot_dimension_numbers<[1], [0], [0], [1], [0, 0, 1, 1], [], []>} : vector<64x32xbf16>, vector<32x96xbf16>, vector<64x96xf32> -> vector<64x96xf32>
    %74 = arith.truncf %71 : vector<64x32xf32> to vector<64x32xbf16>
    %cst_37 = arith.constant dense<0.000000e+00> : vector<64x96xf32>
    %75 = tpu.matmul %74, %6, %cst_37 {dimension_numbers = #tpu.dot_dimension_numbers<[1], [0], [0], [1], [0, 0, 1, 1], [], []>} : vector<64x32xbf16>, vector<32x96xbf16>, vector<64x96xf32> -> vector<64x96xf32>
    %76 = arith.addf %73, %75 : vector<64x96xf32>
    %77 = vector.extract_strided_slice %76 {offsets = [0, 0], sizes = [64, 64], strides = [1, 1]} : vector<64x96xf32> to vector<64x64xf32>
    %cst_38 = arith.constant dense<0.000000e+00> : vector<64x64xf32>
    %78 = tpu.matmul %59, %7, %cst_38 {dimension_numbers = #tpu.dot_dimension_numbers<[1], [0], [0], [1], [0, 0, 1, 1], [], []>} : vector<64x32xbf16>, vector<32x64xbf16>, vector<64x64xf32> -> vector<64x64xf32>
    %79 = arith.addf %77, %78 : vector<64x64xf32>
    %80 = arith.addf %79, %14 : vector<64x64xf32>
    %81 = arith.negf %80 : vector<64x64xf32>
    %82 = math.exp %81 : vector<64x64xf32>
    %cst_39 = arith.constant 1.000000e+00 : f32
    %83 = vector.broadcast %cst_39 : f32 to vector<64x64xf32>
    %84 = arith.addf %83, %82 : vector<64x64xf32>
    %85 = arith.divf %83, %84 : vector<64x64xf32>
    %86 = vector.extract_strided_slice %85 {offsets = [0, 0], sizes = [64, 32], strides = [1, 1]} : vector<64x64xf32> to vector<64x32xf32>
    %87 = vector.extract_strided_slice %85 {offsets = [0, 32], sizes = [64, 32], strides = [1, 1]} : vector<64x64xf32> to vector<64x32xf32>
    %88 = vector.extract_strided_slice %76 {offsets = [0, 64], sizes = [64, 32], strides = [1, 1]} : vector<64x96xf32> to vector<64x32xf32>
    %89 = arith.mulf %86, %58 : vector<64x32xf32>
    %90 = arith.truncf %89 : vector<64x32xf32> to vector<64x32xbf16>
    %cst_40 = arith.constant dense<0.000000e+00> : vector<64x32xf32>
    %91 = tpu.matmul %90, %8, %cst_40 {dimension_numbers = #tpu.dot_dimension_numbers<[1], [0], [0], [1], [0, 0, 1, 1], [], []>} : vector<64x32xbf16>, vector<32x32xbf16>, vector<64x32xf32> -> vector<64x32xf32>
    %92 = arith.addf %88, %91 : vector<64x32xf32>
    %93 = arith.addf %92, %17 : vector<64x32xf32>
    %94 = math.tanh %93 : vector<64x32xf32>
    %cst_41 = arith.constant 1.000000e+00 : f32
    %95 = vector.broadcast %cst_41 : f32 to vector<64x32xf32>
    %96 = arith.subf %95, %87 : vector<64x32xf32>
    %97 = arith.mulf %96, %58 : vector<64x32xf32>
    %98 = arith.mulf %87, %94 : vector<64x32xf32>
    %99 = arith.addf %97, %98 : vector<64x32xf32>
    %100 = arith.truncf %99 : vector<64x32xf32> to vector<64x32xbf16>
    %cst_42 = arith.constant dense<0.000000e+00> : vector<64x64xf32>
    %101 = tpu.matmul %100, %4, %cst_42 {dimension_numbers = #tpu.dot_dimension_numbers<[1], [0], [0], [1], [0, 0, 1, 1], [], []>} : vector<64x32xbf16>, vector<32x64xbf16>, vector<64x64xf32> -> vector<64x64xf32>
    %102 = arith.addf %101, %11 : vector<64x64xf32>
    %103 = vector.extract_strided_slice %102 {offsets = [0, 0], sizes = [64, 32], strides = [1, 1]} : vector<64x64xf32> to vector<64x32xf32>
    %104 = vector.shape_cast %103 : vector<64x32xf32> to vector<4x16x32xf32>
    %105 = arith.truncf %104 : vector<4x16x32xf32> to vector<4x16x32xbf16>
    %106 = vector.extract_strided_slice %102 {offsets = [0, 32], sizes = [64, 32], strides = [1, 1]} : vector<64x64xf32> to vector<64x32xf32>
    %107 = vector.shape_cast %106 : vector<64x32xf32> to vector<4x16x32xf32>
    %108 = arith.truncf %107 : vector<4x16x32xf32> to vector<4x16x32xbf16>
    "tpu.trace_start"() <{level = 10 : i32, message = "bij,bjd->bid"}> : () -> ()
    %cst_43 = arith.constant dense<0.000000e+00> : vector<4x16x32xf32>
    %109 = tpu.matmul %0, %105, %cst_43 {dimension_numbers = #tpu.dot_dimension_numbers<[2], [1], [1], [2], [0, 0, 0, 1, 1, 2], [0], [0]>} : vector<4x16x16xbf16>, vector<4x16x32xbf16>, vector<4x16x32xf32> -> vector<4x16x32xf32>
    "tpu.trace_stop"() : () -> ()
    %110 = vector.shape_cast %109 : vector<4x16x32xf32> to vector<64x32xf32>
    "tpu.trace_start"() <{level = 10 : i32, message = "bij,bjd->bid"}> : () -> ()
    %cst_44 = arith.constant dense<0.000000e+00> : vector<4x16x32xf32>
    %111 = tpu.matmul %1, %108, %cst_44 {dimension_numbers = #tpu.dot_dimension_numbers<[2], [1], [1], [2], [0, 0, 0, 1, 1, 2], [0], [0]>} : vector<4x16x16xbf16>, vector<4x16x32xbf16>, vector<4x16x32xf32> -> vector<4x16x32xf32>
    "tpu.trace_stop"() : () -> ()
    %112 = vector.shape_cast %111 : vector<4x16x32xf32> to vector<64x32xf32>
    %113 = arith.truncf %110 : vector<64x32xf32> to vector<64x32xbf16>
    %cst_45 = arith.constant dense<0.000000e+00> : vector<64x96xf32>
    %114 = tpu.matmul %113, %5, %cst_45 {dimension_numbers = #tpu.dot_dimension_numbers<[1], [0], [0], [1], [0, 0, 1, 1], [], []>} : vector<64x32xbf16>, vector<32x96xbf16>, vector<64x96xf32> -> vector<64x96xf32>
    %115 = arith.truncf %112 : vector<64x32xf32> to vector<64x32xbf16>
    %cst_46 = arith.constant dense<0.000000e+00> : vector<64x96xf32>
    %116 = tpu.matmul %115, %6, %cst_46 {dimension_numbers = #tpu.dot_dimension_numbers<[1], [0], [0], [1], [0, 0, 1, 1], [], []>} : vector<64x32xbf16>, vector<32x96xbf16>, vector<64x96xf32> -> vector<64x96xf32>
    %117 = arith.addf %114, %116 : vector<64x96xf32>
    %118 = vector.extract_strided_slice %117 {offsets = [0, 0], sizes = [64, 64], strides = [1, 1]} : vector<64x96xf32> to vector<64x64xf32>
    %cst_47 = arith.constant dense<0.000000e+00> : vector<64x64xf32>
    %119 = tpu.matmul %100, %7, %cst_47 {dimension_numbers = #tpu.dot_dimension_numbers<[1], [0], [0], [1], [0, 0, 1, 1], [], []>} : vector<64x32xbf16>, vector<32x64xbf16>, vector<64x64xf32> -> vector<64x64xf32>
    %120 = arith.addf %118, %119 : vector<64x64xf32>
    %121 = arith.addf %120, %14 : vector<64x64xf32>
    %122 = arith.negf %121 : vector<64x64xf32>
    %123 = math.exp %122 : vector<64x64xf32>
    %cst_48 = arith.constant 1.000000e+00 : f32
    %124 = vector.broadcast %cst_48 : f32 to vector<64x64xf32>
    %125 = arith.addf %124, %123 : vector<64x64xf32>
    %126 = arith.divf %124, %125 : vector<64x64xf32>
    %127 = vector.extract_strided_slice %126 {offsets = [0, 0], sizes = [64, 32], strides = [1, 1]} : vector<64x64xf32> to vector<64x32xf32>
    %128 = vector.extract_strided_slice %126 {offsets = [0, 32], sizes = [64, 32], strides = [1, 1]} : vector<64x64xf32> to vector<64x32xf32>
    %129 = vector.extract_strided_slice %117 {offsets = [0, 64], sizes = [64, 32], strides = [1, 1]} : vector<64x96xf32> to vector<64x32xf32>
    %130 = arith.mulf %127, %99 : vector<64x32xf32>
    %131 = arith.truncf %130 : vector<64x32xf32> to vector<64x32xbf16>
    %cst_49 = arith.constant dense<0.000000e+00> : vector<64x32xf32>
    %132 = tpu.matmul %131, %8, %cst_49 {dimension_numbers = #tpu.dot_dimension_numbers<[1], [0], [0], [1], [0, 0, 1, 1], [], []>} : vector<64x32xbf16>, vector<32x32xbf16>, vector<64x32xf32> -> vector<64x32xf32>
    %133 = arith.addf %129, %132 : vector<64x32xf32>
    %134 = arith.addf %133, %17 : vector<64x32xf32>
    %135 = math.tanh %134 : vector<64x32xf32>
    %cst_50 = arith.constant 1.000000e+00 : f32
    %136 = vector.broadcast %cst_50 : f32 to vector<64x32xf32>
    %137 = arith.subf %136, %128 : vector<64x32xf32>
    %138 = arith.mulf %137, %99 : vector<64x32xf32>
    %139 = arith.mulf %128, %135 : vector<64x32xf32>
    %140 = arith.addf %138, %139 : vector<64x32xf32>
    %141 = arith.truncf %140 : vector<64x32xf32> to vector<64x32xbf16>
    %c0_51 = arith.constant 0 : index
    %c0_52 = arith.constant 0 : index
    %142 = vector.load %arg13[%c0_51, %c0_52] : memref<32x32xbf16, #tpu.memory_space<vmem>>, vector<32x32xbf16>
    %cst_53 = arith.constant dense<0.000000e+00> : vector<64x32xf32>
    %143 = tpu.matmul %141, %142, %cst_53 {dimension_numbers = #tpu.dot_dimension_numbers<[1], [0], [0], [1], [0, 0, 1, 1], [], []>} : vector<64x32xbf16>, vector<32x32xbf16>, vector<64x32xf32> -> vector<64x32xf32>
    %c0_54 = arith.constant 0 : index
    %c0_55 = arith.constant 0 : index
    %144 = vector.load %arg14[%c0_54, %c0_55] : memref<8x32xbf16, #tpu.memory_space<vmem>>, vector<8x32xbf16>
    %cst_56 = arith.constant dense<0.000000e+00> : vector<64x32xf32>
    %145 = tpu.matmul %3, %144, %cst_56 {dimension_numbers = #tpu.dot_dimension_numbers<[1], [0], [0], [1], [0, 0, 1, 1], [], []>} : vector<64x8xbf16>, vector<8x32xbf16>, vector<64x32xf32> -> vector<64x32xf32>
    %146 = arith.addf %143, %145 : vector<64x32xf32>
    %c0_57 = arith.constant 0 : index
    %c0_58 = arith.constant 0 : index
    %147 = vector.load %arg15[%c0_57, %c0_58] : memref<1x32xf32, #tpu.memory_space<vmem>>, vector<1x32xf32>
    %148 = vector.broadcast %147 : vector<1x32xf32> to vector<64x32xf32>
    %149 = arith.addf %146, %148 : vector<64x32xf32>
    %150 = math.tanh %149 : vector<64x32xf32>
    %151 = arith.truncf %150 : vector<64x32xf32> to vector<64x32xbf16>
    %c0_59 = arith.constant 0 : index
    %c0_60 = arith.constant 0 : index
    %152 = vector.load %arg16[%c0_59, %c0_60] : memref<32x32xbf16, #tpu.memory_space<vmem>>, vector<32x32xbf16>
    %cst_61 = arith.constant dense<0.000000e+00> : vector<64x32xf32>
    %153 = tpu.matmul %151, %152, %cst_61 {dimension_numbers = #tpu.dot_dimension_numbers<[1], [0], [0], [1], [0, 0, 1, 1], [], []>} : vector<64x32xbf16>, vector<32x32xbf16>, vector<64x32xf32> -> vector<64x32xf32>
    %c0_62 = arith.constant 0 : index
    %c0_63 = arith.constant 0 : index
    %154 = vector.load %arg17[%c0_62, %c0_63] : memref<1x32xf32, #tpu.memory_space<vmem>>, vector<1x32xf32>
    %155 = vector.broadcast %154 : vector<1x32xf32> to vector<64x32xf32>
    %156 = arith.addf %153, %155 : vector<64x32xf32>
    %c0_64 = arith.constant 0 : index
    %c0_65 = arith.constant 0 : index
    %157 = vector.load %arg18[%c0_64, %c0_65] : memref<64x32xf32, #tpu.memory_space<vmem>>, vector<64x32xf32>
    tpu.vector_store %arg18[%c0_64, %c0_65], %156 {strides = array<i32>} : memref<64x32xf32, #tpu.memory_space<vmem>>, vector<64x32xf32>,
    return
  }
  func.func @transform_0(%arg0: i32) -> (i32, i32, i32) {
    %c0_i32 = arith.constant 0 : i32
    %c0_i32_0 = arith.constant 0 : i32
    %c0_i32_1 = arith.constant 0 : i32
    return %arg0, %c0_i32, %c0_i32_0 : i32, i32, i32
  }
  func.func @transform_1(%arg0: i32) -> (i32, i32, i32) {
    %c0_i32 = arith.constant 0 : i32
    %c0_i32_0 = arith.constant 0 : i32
    %c0_i32_1 = arith.constant 0 : i32
    return %arg0, %c0_i32, %c0_i32_0 : i32, i32, i32
  }
  func.func @transform_2(%arg0: i32) -> (i32, i32) {
    %c0_i32 = arith.constant 0 : i32
    %c0_i32_0 = arith.constant 0 : i32
    return %arg0, %c0_i32 : i32, i32
  }
  func.func @transform_3(%arg0: i32) -> (i32, i32) {
    %c0_i32 = arith.constant 0 : i32
    %c0_i32_0 = arith.constant 0 : i32
    return %arg0, %c0_i32 : i32, i32
  }
  func.func @transform_4(%arg0: i32) -> (i32, i32) {
    %c0_i32 = arith.constant 0 : i32
    %c0_i32_0 = arith.constant 0 : i32
    %c0_i32_1 = arith.constant 0 : i32
    return %c0_i32, %c0_i32_0 : i32, i32
  }
  func.func @transform_5(%arg0: i32) -> (i32, i32) {
    %c0_i32 = arith.constant 0 : i32
    %c0_i32_0 = arith.constant 0 : i32
    %c0_i32_1 = arith.constant 0 : i32
    return %c0_i32, %c0_i32_0 : i32, i32
  }
  func.func @transform_6(%arg0: i32) -> (i32, i32) {
    %c0_i32 = arith.constant 0 : i32
    %c0_i32_0 = arith.constant 0 : i32
    %c0_i32_1 = arith.constant 0 : i32
    return %c0_i32, %c0_i32_0 : i32, i32
  }
  func.func @transform_7(%arg0: i32) -> (i32, i32) {
    %c0_i32 = arith.constant 0 : i32
    %c0_i32_0 = arith.constant 0 : i32
    %c0_i32_1 = arith.constant 0 : i32
    return %c0_i32, %c0_i32_0 : i32, i32
  }
  func.func @transform_8(%arg0: i32) -> (i32, i32) {
    %c0_i32 = arith.constant 0 : i32
    %c0_i32_0 = arith.constant 0 : i32
    %c0_i32_1 = arith.constant 0 : i32
    return %c0_i32, %c0_i32_0 : i32, i32
  }
  func.func @transform_9(%arg0: i32) -> (i32, i32) {
    %c0_i32 = arith.constant 0 : i32
    %c0_i32_0 = arith.constant 0 : i32
    %c0_i32_1 = arith.constant 0 : i32
    return %c0_i32, %c0_i32_0 : i32, i32
  }
  func.func @transform_10(%arg0: i32) -> (i32, i32) {
    %c0_i32 = arith.constant 0 : i32
    %c0_i32_0 = arith.constant 0 : i32
    %c0_i32_1 = arith.constant 0 : i32
    return %c0_i32, %c0_i32_0 : i32, i32
  }
  func.func @transform_11(%arg0: i32) -> (i32, i32) {
    %c0_i32 = arith.constant 0 : i32
    %c0_i32_0 = arith.constant 0 : i32
    %c0_i32_1 = arith.constant 0 : i32
    return %c0_i32, %c0_i32_0 : i32, i32
  }
  func.func @transform_12(%arg0: i32) -> (i32, i32) {
    %c0_i32 = arith.constant 0 : i32
    %c0_i32_0 = arith.constant 0 : i32
    %c0_i32_1 = arith.constant 0 : i32
    return %c0_i32, %c0_i32_0 : i32, i32
  }
  func.func @transform_13(%arg0: i32) -> (i32, i32) {
    %c0_i32 = arith.constant 0 : i32
    %c0_i32_0 = arith.constant 0 : i32
    %c0_i32_1 = arith.constant 0 : i32
    return %c0_i32, %c0_i32_0 : i32, i32
  }
  func.func @transform_14(%arg0: i32) -> (i32, i32) {
    %c0_i32 = arith.constant 0 : i32
    %c0_i32_0 = arith.constant 0 : i32
    %c0_i32_1 = arith.constant 0 : i32
    return %c0_i32, %c0_i32_0 : i32, i32
  }
  func.func @transform_15(%arg0: i32) -> (i32, i32) {
    %c0_i32 = arith.constant 0 : i32
    %c0_i32_0 = arith.constant 0 : i32
    %c0_i32_1 = arith.constant 0 : i32
    return %c0_i32, %c0_i32_0 : i32, i32
  }
  func.func @transform_16(%arg0: i32) -> (i32, i32) {
    %c0_i32 = arith.constant 0 : i32
    %c0_i32_0 = arith.constant 0 : i32
    %c0_i32_1 = arith.constant 0 : i32
    return %c0_i32, %c0_i32_0 : i32, i32
  }
  func.func @transform_17(%arg0: i32) -> (i32, i32) {
    %c0_i32 = arith.constant 0 : i32
    %c0_i32_0 = arith.constant 0 : i32
    return %arg0, %c0_i32 : i32, i32
  }
}

</mosaic_0001>

<bundles_post_ra>
// kernel: tpu_custom_call.1
= control target key start
LH: loop header
LB: loop body
LE: loop exit
PB: predicated region body
PF: predicated region fallthrough
CT: control target
= control target key end

     0   :  { %s6380_s0 = inlined_call_operand.vmem [shape: bf16[8,16,16], index: 0, kind: input, shape index: {}]   ;;  %s6381_s1 = inlined_call_operand.vmem [shape: bf16[8,16,16], index: 1, kind: input, shape index: {}]   ;;  %s6382_s2 = inlined_call_operand.vmem [shape: f32[128,32], index: 2, kind: input, shape index: {}]   ;;  %s6383_s3 = inlined_call_operand.vmem [shape: bf16[128,8], index: 3, kind: input, shape index: {}]   ;;  %s6384_s4 = inlined_call_operand.vmem [shape: bf16[32,64], index: 4, kind: input, shape index: {}]   ;;  %s6385_s5 = inlined_call_operand.vmem [shape: f32[1,64], index: 5, kind: input, shape index: {}]   ;;  %s6386_s6 = inlined_call_operand.vmem [shape: bf16[32,96], index: 6, kind: input, shape index: {}]   ;;  %s6387_s7 = inlined_call_operand.vmem [shape: bf16[32,96], index: 7, kind: input, shape index: {}]   ;;  %s6388_s8 = inlined_call_operand.vmem [shape: bf16[32,64], index: 8, kind: input, shape index: {}]   ;;  %s6389_s9 = inlined_call_operand.vmem [shape: bf16[32,32], index: 9, kind: input, shape index: {}]   ;;  %s6390_s10 = inlined_call_operand.hbm [shape: f32[1,64], index: 10, kind: input, shape index: {}]   ;;  %s6391_s11 = inlined_call_operand.hbm [shape: f32[1,32], index: 11, kind: input, shape index: {}]   ;;  %s6392_s12 = inlined_call_operand.vmem [shape: bf16[32,32], index: 12, kind: input, shape index: {}]   ;;  %s6393_s13 = inlined_call_operand.vmem [shape: bf16[8,32], index: 13, kind: input, shape index: {}]   ;;  %s6394_s14 = inlined_call_operand.vmem [shape: f32[1,32], index: 14, kind: input, shape index: {}]   ;;  %s6395_s15 = inlined_call_operand.vmem [shape: bf16[32,32], index: 15, kind: input, shape index: {}]   ;;  %s6396_s16 = inlined_call_operand.vmem [shape: f32[1,32], index: 16, kind: input, shape index: {}]   ;;  %s6397_s17 = inlined_call_operand.vmem [shape: f32[128,32], index: 17, kind: output, shape index: {}]  }
   0x1   :  { %6400 = sst [smem:[#allocation8_spill]] %s6380_s0 }
   0x2   :  { %6401 = sst [smem:[#allocation9_spill]] %s6381_s1 }
   0x3   :  { %22 = vsyncpa [#allocation3], 0 }
   0x4   :  { %23 = vsyncpa [#allocation5], 0  ;;  %s5351_s24 = smov 0  }
   0x5 LB: > { %s5357_s25 = sadd.s32 4294967295, %s5252_s24   ;;  %p4222_p0 = scmp.ge.s32.totalorder %s5252_s24, 1  ;;  %s5252_s24 = sphi %s5351_s24, %s29_s24  }
   0x6   : > { %p437_p1 = scmp.lt.s32.totalorder %s5252_s24, 3  ;;  %p6398_p2 = scmp.eq.s32.totalorder %s5357_s25, 0 }
   0x7   : > { %s5254_s27 = smov [#allocation2]   ;;  %s5255_s29 = smov [#allocation4]  }
   0x8   : > { %p5362_p3 = pnand %p4222_p0, %p437_p1  ;;  %s468_s28 = sshll.u32 %s5254_s27, 4  ;;  %s469_s28 = int_to_ptr.vmem [resolvable:$true] %s468_s28 }
   0x9   : > { %s479_s0 = sshll.u32 %s5255_s29, 4  ;;  %s5182_s1 = scalar_lea.hbm %s6390_s10, 16  ;;  %s5374_s0 = int_to_ptr.vmem [resolvable:$true] %s479_s0 }
   0xa   : > { %s6402_s26 = scalar_select %p5362_p3, 1, 0 }
   0xb   : > { %p4950_p4 = pneg %p5362_p3  ;;  %p5183_p6 = scmp.ne.s32.totalorder %s6390_s10, %s5182_s1 }
   0xc   : > { %p5189_p10 = scmp.lt.u32.totalorder %s5182_s1, %s6390_s10 }
   0xd   : > { %p5370_p5 = pnand %p6398_p2, %p4950_p4 }
   0xf   : > { %p5184_p7 = pneg %p5370_p5 }
  0x11   : > { %p5185_p8 = pnand %p5184_p7, %p5183_p6 }
  0x13   : > { %p5186_p9 = pneg %p5185_p8 }
  0x15   : > { %p5191_p11 = pnand %p5189_p10, %p5186_p9 }
  0x17   : > { %5194 = shalt.err (!%p5191_p11)
}
  0x18   : > { %s5195_s27 = scalar_lea.vmem %s469_s28, 16  ;;  %s5202_s29 = scalar_lea.vmem %s469_s28, 32 }
  0x19   : > { %p5196_p12 = scmp.ne.s32.totalorder %s469_s28, %s5195_s27  ;;  %p5203_p1 = scmp.lt.s32.totalorder %s469_s28, %s469_s28 }
  0x1a   : > { %p5204_p4 = scmp.lt.s32.totalorder %s5202_s29, %s5195_s27 }
  0x1b   : > { %p5198_p13 = pnand %p5196_p12, %p5184_p7 }
  0x1c   : > { %p5205_p2 = por %p5204_p4, %p5203_p1 }
  0x1d   : > { %p5199_p0 = pneg %p5198_p13 }
  0x1f   : > { %p5206_p3 = pnand %p5205_p2, %p5199_p0 }
  0x21   : > { %5209 = shalt.err (!%p5206_p3)
}
  0x22   : > { %4953 = dma.hbm_to_vmem [thread:$0]  (!%p5370_p5), %s6390_s10, 16, %s469_s28, [#allocation3]  }
  0x23   : > { %s5210_s21 = scalar_lea.hbm %s6391_s11, 16 }
  0x24   : > { %p5211_p6 = scmp.ne.s32.totalorder %s6391_s11, %s5210_s21  ;;  %p5217_p3 = scmp.lt.u32.totalorder %s5210_s21, %s6391_s11 }
  0x26   : > { %p5213_p8 = pnand %p5211_p6, %p5184_p7 }
  0x28   : > { %p5214_p2 = pneg %p5213_p8 }
  0x2a   : > { %p5219_p9 = pnand %p5217_p3, %p5214_p2 }
  0x2c   : > { %5222 = shalt.err (!%p5219_p9)
}
  0x2d   : > { %s5223_s28 = scalar_lea.vmem %s5374_s0, 16  ;;  %s5230_s18 = scalar_lea.vmem %s5374_s0, 32 }
  0x2e   : > { %p5224_p10 = scmp.ne.s32.totalorder %s5374_s0, %s5223_s28  ;;  %p5231_p13 = scmp.lt.s32.totalorder %s5374_s0, %s5374_s0 }
  0x2f   : > { %p5232_p0 = scmp.lt.s32.totalorder %s5230_s18, %s5223_s28 }
  0x30   : > { %p5226_p11 = pnand %p5224_p10, %p5184_p7 }
  0x31   : > { %p5233_p1 = por %p5232_p0, %p5231_p13 }
  0x32   : > { %p5227_p12 = pneg %p5226_p11 }
  0x34   : > { %p5234_p4 = pnand %p5233_p1, %p5227_p12 }
  0x36   : > { %5237 = shalt.err (!%p5234_p4)
}
  0x37   : > { %4956 = dma.hbm_to_vmem [thread:$0]  (!%p5370_p5), %s6391_s11, 16, %s5374_s0, [#allocation5]  }
  0x38   : > { %p6404_p6 = scmp.ne.s32.totalorder %s6402_s26, 0 }
  0x39   : > { %p6405_p7 = scmp.eq.s32.totalorder (!%p6404_p6), %s5357_s25, 0 }
  0x3a   : > { %545 = sbr.rel (%p6404_p6) target bundleno = 4762 (0x129a), region = 88 }
  0x41   : > { %5243 = dma.done.wait (%p6405_p7), [#allocation3], 16   ;;  %p6406_p8 = pmov %p6405_p7 }
  0x42   : > { %p6407_p2 = pmov %p6405_p7 }
  0x43   : > { %5245 = vsyncadd (%p6406_p8), [#allocation3], 4294967280 }
  0x44   : > { %5247 = dma.done.wait (%p6407_p2), [#allocation5], 16   ;;  %p6408_p3 = pmov %p6407_p2 }
  0x45   : > { %s4235_s30 = sshll.u32 %s5357_s25, 3  ;;  %v5446_v0 = vld [vmem:[%s6384_s4] sm:$0xff]   ;;  %v5451_v1 = vld [vmem:[%s6384_s4 + $0x8] sm:$0xff]   ;;  %vm739_vm0 = vcmask 261120   ;;  %v5256_v14 = vmov 0.0   ;;  %s4229_s28 = sshll.u32 %s5357_s25, 2 }
  0x46   : > { %5249 = vsyncadd (%p6408_p3), [#allocation5], 4294967280  ;;  %p633_p9 = scmp.lt.s32.totalorder %s4235_s30, 15  ;;  %4551 = vmatprep.subr.bf16.mxu0 %v5446_v0  ;;  %4569 = vmatprep.subr.bf16.mxu1 %v5256_v14  ;;  %p619_p5 = scmp.lt.s32.totalorder %s4229_s28, 7  ;;  %vm5257_vm1 = vmmov 0   ;;  %vm826_vm2 = vcmask 130048  }
  0x47   : > { %4552 = vmatpush3.bf16.msra.mxu0 %v5446_v0  ;;  %s6409_s0 = sld [smem:[#allocation8_spill]]  ;;  %4571 = vmatprep.mubr.msk.bf16.mxu1 %vm5257_vm1, %v5256_v14  ;;  %s6410_s25 = sld [smem:[#allocation9_spill]]  ;;  %v5517_v16 = vld [vmem:[%s6385_s5] ss:$0 sm:$0xff]  ;;  %v5601_v49 = vld [vmem:[%s6387_s7 + $0x8] sm:$0xff]   ;;  %vm3801_vm3 = vcmask 1043456  }
  0x48   : > { %s6412_s30 = smov (!%p633_p9, %s4235_s30), 15  ;;  %4553 = vmatprep.subr.bf16.mxu0 %v5451_v1  ;;  %s6414_s28 = smov (!%p619_p5, %s4229_s28), 7  ;;  %v5594_v48 = vld [vmem:[%s6387_s7] sm:$0xff]   ;;  %v5621_v62 = vld [vmem:[%s6388_s8 + $0x8] sm:$0xff]   ;;  %vm3788_vm4 = vcmask 64512  }
  0x49   : > { %s4236_s26 = sshll.u32 %s6412_s30, 3  ;;  %s4394_s18 = sshll.u32 %s6414_s28, 3  ;;  %v5608_v51 = vld [vmem:[%s6388_s8] sm:$0xff]  }
  0x4a   : > { %s636_s21 = scalar_lea.vmem %s6382_s2, %s4236_s26  ;;  %s5258_s28 = smov 96   ;;  %v5613_v54 = vld [vmem:[%s6386_s6] sm:$0xff]  }
  0x4b   : > { %v5454_v2 = vld [vmem:[%s636_s21] sm:$0xff]  ;;  %v5456_v3 = vld [vmem:[%s636_s21 + $0x8] sm:$0xff]  ;;  %v5463_v5 = vld [vmem:[%s636_s21 + $0x10] sm:$0xff]  ;;  %4554 = vmatpush3.bf16.msra.mxu0 %v5451_v1  ;;  %s5259_s27 = smov 64   ;;  %s5260_s29 = smov 32  }
  0x4c   : > { %v5461_v4 = vpack.c.bf16 %v5456_v3, %v5454_v2  ;;  %v5465_v6 = vld [vmem:[%s636_s21 + $0x18] sm:$0xff]  ;;  %v5468_v7 = vld [vmem:[%s636_s21 + $0x20] sm:$0xff]  ;;  %v5470_v8 = vld [vmem:[%s636_s21 + $0x28] sm:$0xff]  ;;  %4563 = vmatprep.subr.bf16.mxu0 %v5256_v14 }
  0x4d   : > { %v5476_v9 = vpack.c.bf16 %v5465_v6, %v5463_v5  ;;  %v5481_v10 = vpack.c.bf16 %v5470_v8, %v5468_v7  ;;  %v5483_v11 = vld [vmem:[%s636_s21 + $0x30] sm:$0xff]  ;;  %v5485_v12 = vld [vmem:[%s636_s21 + $0x38] sm:$0xff]  ;;  %s5503_s20 = scalar_lea.vmem %s6409_s0, %s4394_s18  ;;  %s5512_s23 = scalar_lea.vmem %s6410_s25, %s4394_s18 }
  0x4e   : > { %4555 = vmatprep.mubr.msk.bf16.mxu0 %vm739_vm0, %v5461_v4  ;;  %v5493_v13 = vpack.c.bf16 %v5485_v12, %v5483_v11  ;;  %v5524_v26 = vld [vmem:[%s5503_s20 + $0x8] sm:$0xff]   ;;  %v5527_v27 = vld [vmem:[%s5503_s20] sm:$0xff]   ;;  %v5546_v38 = vld [vmem:[%s5503_s20 + $0x10] sm:$0xff]   ;;  %s4238_s21 = sshll.u32 %s6412_s30, 2  ;;  %s648_s18 = scalar_lea.vmem %s6397_s17, %s4236_s26 }
  0x4f   : > { %4556 = vmatmul.mubr.msk.bf16.vlgmr.msra.gmra.mrb[0].mxu0 %vm739_vm0, %v5476_v9  ;;  %v5549_v39 = vld [vmem:[%s5503_s20 + $0x18] sm:$0xff]   ;;  %v5564_v41 = vld [vmem:[%s5512_s23] sm:$0xff]   ;;  %v5570_v43 = vld [vmem:[%s5512_s23 + $0x8] sm:$0xff]  }
  0x50   : > { %4559 = vmatprep.mubr.msk.bf16.mxu0 %vm739_vm0, %v5481_v10  ;;  %v5578_v45 = vld [vmem:[%s5512_s23 + $0x10] sm:$0xff]   ;;  %v5585_v47 = vld [vmem:[%s5512_s23 + $0x18] sm:$0xff]  }
  0x57   : > { %4560 = vmatmul.mubr.msk.bf16.gmra.mrb[4].mxu0 %vm739_vm0, %v5493_v13 }
  0x58   : > { %4565 = vmatprep.mubr.msk.bf16.mxu0 %vm5257_vm1, %v5256_v14 }
 0x122   : > { %v4557_v15 = vpop.f32.mrb[0].mxu0 }
 0x123   : > { %v786_v17 = vpop.f32.mrb[1].mxu0  ;;  %v795_v19 = vadd.f32 %v4557_v15, %v5517_v16 }
 0x124   : > { %v4558_v18 = vpop.f32.mrb[2].mxu0  ;;  %v787_v22 = vadd.f32 %v5517_v16, %v786_v17 }
 0x125   : > { %v798_v20 = vadd.f32 %v4558_v18, %v5517_v16  ;;  %v789_v21 = vpop.f32.mrb[3].mxu0 }
 0x126   : > { %v790_v23 = vadd.f32 %v5517_v16, %v789_v21 }
 0x127   : > { %v818_v24 = vpack.c.bf16 %v798_v20, %v795_v19 }
 0x128   : > { %v817_v25 = vpack.c.bf16 %v790_v23, %v787_v22 }
 0x129   : > { %4570 = vmatpush3.bf16.msra.mxu1 %v818_v24 }
 0x12a   : > { %v4561_v28 = vpop.f32.mrb[4].mxu0  ;;  %1024 = vrot.lane.b32.xlu0 %v817_v25, %s5258_s28  ;;  %4564 = vmatpush3.bf16.msra.mxu0 %v817_v25 }
 0x12b   : > { %v802_v29 = vpop.f32.mrb[5].mxu0  ;;  %4581 = vmatprep.subr.bf16.mxu0 %v5256_v14  ;;  %4575 = vmatprep.subr.bf16.mxu1 %v5256_v14  ;;  %v811_v31 = vadd.f32 %v4561_v28, %v5517_v16 }
 0x12c   : > { %v4562_v30 = vpop.f32.mrb[6].mxu0  ;;  %4572 = vmatmul.mubr.msk.bf16.vlgmr.msra.gmra.mrb[0].mxu1 %vm826_vm2, %v5524_v26  ;;  %v803_v34 = vadd.f32 %v5517_v16, %v802_v29 }
 0x12d   : > { %v814_v32 = vadd.f32 %v4562_v30, %v5517_v16  ;;  %v805_v33 = vpop.f32.mrb[7].mxu0  ;;  %4566 = vmatmul.mubr.msk.bf16.vlgmr.msra.gmra.mrb[8].mxu0 %vm826_vm2, %v5527_v27  ;;  %4577 = vmatprep.mubr.msk.bf16.mxu1 %vm5257_vm1, %v5256_v14 }
 0x12e   : > { %v806_v35 = vadd.f32 %v5517_v16, %v805_v33  ;;  %1077 = vrot.lane.b32.xlu0 %v818_v24, %s5258_s28  ;;  %4583 = vmatprep.mubr.msk.bf16.mxu0 %vm5257_vm1, %v5256_v14 }
 0x12f   : > { %v820_v36 = vpack.c.bf16 %v814_v32, %v811_v31 }
 0x130   : > { %v819_v37 = vpack.c.bf16 %v806_v35, %v803_v34 }
 0x131   : > { %4582 = vmatpush3.bf16.msra.mxu0 %v820_v36 }
 0x132   : > { %1130 = vrot.lane.b32.xlu1 %v819_v37, %s5258_s28  ;;  %4576 = vmatpush3.bf16.msra.mxu1 %v819_v37 }
 0x133   : > { %4587 = vmatprep.subr.bf16.mxu1 %v5256_v14  ;;  %4593 = vmatprep.subr.bf16.mxu0 %v5256_v14 }
 0x135   : > { %4578 = vmatmul.mubr.msk.bf16.vlgmr.msra.gmra.mrb[4].mxu1 %vm826_vm2, %v5546_v38  ;;  %4584 = vmatmul.mubr.msk.bf16.vlgmr.msra.gmra.mrb[12].mxu0 %vm826_vm2, %v5549_v39 }
 0x136   : > { %1183 = vrot.lane.b32.xlu1 %v820_v36, %s5258_s28  ;;  %4589 = vmatprep.mubr.msk.bf16.mxu1 %vm5257_vm1, %v5256_v14 }
 0x137   : > { %4595 = vmatprep.mubr.msk.bf16.mxu0 %vm5257_vm1, %v5256_v14 }
 0x19c   : > { %v1025_v40 = vpop.permute.xlu0 %1024 }
 0x19d   : > { %4588 = vmatpush3.bf16.msra.mxu1 %v1025_v40 }
 0x19e   : > { %4599 = vmatprep.subr.bf16.mxu1 %v5256_v14 }
 0x1a0   : > { %v1078_v42 = vpop.permute.xlu0 %1077  ;;  %4590 = vmatmul.mubr.msk.bf16.vlgmr.msra.gmra.mrb[8].mxu1 %vm826_vm2, %v5564_v41 }
 0x1a1   : > { %4594 = vmatpush3.bf16.msra.mxu0 %v1078_v42  ;;  %4601 = vmatprep.mubr.msk.bf16.mxu1 %vm5257_vm1, %v5256_v14 }
 0x1a2   : > { %4605 = vmatprep.subr.bf16.mxu0 %v5256_v14 }
 0x1a4   : > { %v1131_v44 = vpop.permute.xlu1 %1130  ;;  %4596 = vmatmul.mubr.msk.bf16.vlgmr.msra.gmra.mrb[16].mxu0 %vm826_vm2, %v5570_v43 }
 0x1a5   : > { %4600 = vmatpush3.bf16.msra.mxu1 %v1131_v44  ;;  %4607 = vmatprep.mubr.msk.bf16.mxu0 %vm5257_vm1, %v5256_v14 }
 0x1a6   : > { %4611 = vmatprep.subr.bf16.mxu1 %v5594_v48 }
 0x1a8   : > { %v1184_v46 = vpop.permute.xlu1 %1183  ;;  %4602 = vmatmul.mubr.msk.bf16.vlgmr.msra.gmra.mrb[12].mxu1 %vm826_vm2, %v5578_v45 }
 0x1a9   : > { %4606 = vmatpush3.bf16.msra.mxu0 %v1184_v46  ;;  %4612 = vmatpush3.bf16.msra.mxu1 %v5594_v48 }
 0x1aa   : > { %4613 = vmatprep.subr.bf16.mxu1 %v5601_v49  ;;  %4635 = vmatprep.subr.bf16.mxu0 %v5608_v51 }
 0x1ac   : > { %4608 = vmatmul.mubr.msk.bf16.vlgmr.msra.gmra.mrb[20].mxu0 %vm826_vm2, %v5585_v47 }
 0x1ad   : > { %4639 = vmatprep.mubr.msk.bf16.mxu0 %vm739_vm0, %v5461_v4  ;;  %4614 = vmatpush3.bf16.msra.mxu1 %v5601_v49 }
 0x1ae   : > { %4623 = vmatprep.subr.bf16.mxu1 %v5613_v54  ;;  %4636 = vmatpush3.bf16.msra.mxu0 %v5608_v51 }
 0x1af   : > { %4637 = vmatprep.subr.bf16.mxu0 %v5621_v62 }
 0x1b2   : > { %4638 = vmatpush3.bf16.msra.mxu0 %v5621_v62 }
 0x1b5   : > { %4640 = vmatmul.mubr.msk.bf16.vlgmr.msra.gmra.mrb[24].mxu0 %vm739_vm0, %v5476_v9 }
 0x1b6   : > { %4643 = vmatprep.mubr.msk.bf16.mxu0 %vm739_vm0, %v5481_v10  ;;  %v5635_v10 = vld [vmem:[%s6386_s6 + $0x8] sm:$0xff]  }
 0x1bd   : > { %4644 = vmatmul.mubr.msk.bf16.gmra.mrb[28].mxu0 %vm739_vm0, %v5493_v13 }
 0x1ff   : > { %v913_v50 = vpop.f32.mrb[0].mxu1 }
 0x200   : > { %v864_v52 = vpop.f32.mrb[8].mxu0  ;;  %v4573_v53 = vpop.f32.mrb[1].mxu1 }
 0x201   : > { %v4567_v55 = vpop.f32.mrb[9].mxu0  ;;  %v916_v56 = vpop.f32.mrb[2].mxu1 }
 0x202   : > { %v1231_v57 = vpack.c.bf16 %v916_v56, %v913_v50  ;;  %v867_v58 = vpop.f32.mrb[10].mxu0  ;;  %v4574_v59 = vpop.f32.mrb[3].mxu1 }
 0x203   : > { %v1230_v60 = vpack.c.bf16 %v867_v58, %v864_v52  ;;  %v4568_v61 = vpop.f32.mrb[11].mxu0 }
 0x208   : > { %v962_v63 = vpop.f32.mrb[4].mxu1  ;;  %v1011_v4 = vpop.f32.mrb[12].mxu0 }
 0x209   : > { %v4579_v15 = vpop.f32.mrb[5].mxu1  ;;  %v4585_v17 = vpop.f32.mrb[13].mxu0 }
 0x20a   : > { %v965_v18 = vpop.f32.mrb[6].mxu1  ;;  %v1014_v19 = vpop.f32.mrb[14].mxu0 }
 0x20b   : > { %v1232_v20 = vpack.c.bf16 %v965_v18, %v962_v63  ;;  %v4580_v21 = vpop.f32.mrb[7].mxu1  ;;  %v1233_v22 = vpack.c.bf16 %v1014_v19, %v1011_v4  ;;  %v4586_v23 = vpop.f32.mrb[15].mxu0  ;;  %v5667_v63 = vld [vmem:[#allocation2] ss:$0 sm:$0xff] }
 0x273   : > { %v1064_v24 = vpop.f32.mrb[8].mxu1 }
 0x274   : > { %v4591_v25 = vpop.f32.mrb[9].mxu1 }
 0x275   : > { %v1067_v28 = vpop.f32.mrb[10].mxu1 }
 0x276   : > { %v1234_v29 = vpack.c.bf16 %v1067_v28, %v1064_v24  ;;  %v4592_v30 = vpop.f32.mrb[11].mxu1 }
 0x277   : > { %v1117_v31 = vpop.f32.mrb[16].mxu0 }
 0x278   : > { %v4597_v32 = vpop.f32.mrb[17].mxu0  ;;  %4615 = vmatprep.mubr.msk.bf16.mxu1 %vm739_vm0, %v1234_v29 }
 0x279   : > { %v1120_v9 = vpop.f32.mrb[18].mxu0 }
 0x27a   : > { %v1235_v33 = vpack.c.bf16 %v1120_v9, %v1117_v31  ;;  %v4598_v34 = vpop.f32.mrb[19].mxu0 }
 0x27b   : > { %v1170_v35 = vpop.f32.mrb[12].mxu1 }
 0x27c   : > { %v4603_v36 = vpop.f32.mrb[13].mxu1  ;;  %4616 = vmatmul.mubr.msk.bf16.vlgmr.msra.gmra.mrb[16].mxu1 %vm739_vm0, %v1235_v33 }
 0x27d   : > { %v1173_v13 = vpop.f32.mrb[14].mxu1  ;;  %4624 = vmatpush3.bf16.msra.mxu1 %v5613_v54 }
 0x27e   : > { %v1236_v37 = vpack.c.bf16 %v1173_v13, %v1170_v35  ;;  %v4604_v40 = vpop.f32.mrb[15].mxu1  ;;  %4625 = vmatprep.subr.bf16.mxu1 %v5635_v10 }
 0x27f   : > { %v1223_v42 = vpop.f32.mrb[20].mxu0 }
 0x280   : > { %v4609_v44 = vpop.f32.mrb[21].mxu0  ;;  %4619 = vmatprep.mubr.msk.bf16.mxu1 %vm739_vm0, %v1236_v37 }
 0x281   : > { %v1226_v46 = vpop.f32.mrb[22].mxu0  ;;  %4626 = vmatpush3.bf16.msra.mxu1 %v5635_v10 }
 0x282   : > { %v1237_v50 = vpack.c.bf16 %v1226_v46, %v1223_v42  ;;  %v4610_v52 = vpop.f32.mrb[23].mxu0  ;;  %4659 = vmatprep.subr.bf16.mxu1 %v5446_v0 }
 0x284   : > { %4620 = vmatmul.mubr.msk.bf16.gmra.mrb[20].mxu1 %vm739_vm0, %v1237_v50 }
 0x285   : > { %4627 = vmatprep.mubr.msk.bf16.mxu1 %vm739_vm0, %v1230_v60 }
 0x288   : > { %v4641_v53 = vpop.f32.mrb[24].mxu0 }
 0x289   : > { %v1462_v55 = vpop.f32.mrb[25].mxu0 }
 0x28a   : > { %v4642_v56 = vpop.f32.mrb[26].mxu0 }
 0x28b   : > { %v1465_v58 = vpop.f32.mrb[27].mxu0 }
 0x28c   : > { %4628 = vmatmul.mubr.msk.bf16.vlgmr.msra.gmra.mrb[16].mxu1 %vm739_vm0, %v1231_v57 }
 0x28d   : > { %4631 = vmatprep.mubr.msk.bf16.mxu1 %vm739_vm0, %v1232_v20  ;;  %4660 = vmatpush3.bf16.msra.mxu1 %v5446_v0  ;;  %v5655_v0 = vld [vmem:[%s6389_s9] sm:$0xff]  }
 0x28e   : > { %4661 = vmatprep.subr.bf16.mxu1 %v5451_v1  ;;  %4647 = vmatprep.subr.bf16.mxu0 %v5655_v0 }
 0x28f   : > { %4648 = vmatpush3.bf16.msra.mxu0 %v5655_v0 }
 0x290   : > { %v4645_v59 = vpop.f32.mrb[28].mxu0 }
 0x291   : > { %4662 = vmatpush3.bf16.msra.mxu1 %v5451_v1  ;;  %v1478_v60 = vpop.f32.mrb[29].mxu0  ;;  %v5661_v1 = vld [vmem:[%s6389_s9 + $0x8] sm:$0xff]  }
 0x292   : > { %4683 = vmatprep.subr.bf16.mxu1 %v5256_v14  ;;  %v4646_v61 = vpop.f32.mrb[30].mxu0  ;;  %4649 = vmatprep.subr.bf16.mxu0 %v5661_v1 }
 0x293   : > { %v1481_v57 = vpop.f32.mrb[31].mxu0  ;;  %4650 = vmatpush3.bf16.msra.mxu0 %v5661_v1 }
 0x294   : > { %4632 = vmatmul.mubr.msk.bf16.gmra.mrb[20].mxu1 %vm739_vm0, %v1233_v22  ;;  %4671 = vmatprep.subr.bf16.mxu0 %v5256_v14 }
 0x35f   : > { %v5669_v4 = vpop.f32.mrb[16].mxu1 }
 0x360   : > { %v1495_v15 = vadd.f32 %v4641_v53, %v5669_v4  ;;  %v5672_v17 = vpop.f32.mrb[17].mxu1 }
 0x361   : > { %v1493_v18 = vadd.f32 %v1462_v55, %v5672_v17  ;;  %v5675_v19 = vpop.f32.mrb[18].mxu1 }
 0x362   : > { %v1503_v20 = vadd.f32 %v5667_v63, %v1495_v15  ;;  %v1496_v21 = vadd.f32 %v4642_v56, %v5675_v19  ;;  %v5679_v22 = vpop.f32.mrb[19].mxu1 }
 0x363   : > { %v1501_v23 = vadd.f32 %v5667_v63, %v1493_v18  ;;  %v1494_v24 = vadd.f32 %v1465_v58, %v5679_v22 }
 0x364   : > { %v4286_v25 = vmul.f32 -1.442695, %v1503_v20  ;;  %v1504_v28 = vadd.f32 %v5667_v63, %v1496_v21 }
 0x365   : > { %v4284_v29 = vmul.f32 -1.442695, %v1501_v23  ;;  %v1502_v30 = vadd.f32 %v5667_v63, %v1494_v24 }
 0x366   : > { %5002 = vpow2.f32 %v4286_v25  ;;  %v4287_v31 = vmul.f32 -1.442695, %v1504_v28 }
 0x367   : > { %5004 = vpow2.f32 %v4284_v29  ;;  %v4285_v32 = vmul.f32 -1.442695, %v1502_v30  ;;  %v5685_v9 = vpop.f32.mrb[20].mxu1 }
 0x368   : > { %5006 = vpow2.f32 %v4287_v31  ;;  %v1499_v33 = vadd.f32 %v4645_v59, %v5685_v9  ;;  %v5688_v34 = vpop.f32.mrb[21].mxu1 }
 0x369   : > { %5008 = vpow2.f32 %v4285_v32  ;;  %v1497_v35 = vadd.f32 %v1478_v60, %v5688_v34  ;;  %v5691_v36 = vpop.f32.mrb[22].mxu1 }
 0x36a   : > { %v1507_v13 = vadd.f32 %v5667_v63, %v1499_v33  ;;  %v1500_v37 = vadd.f32 %v4646_v61, %v5691_v36  ;;  %v5695_v40 = vpop.f32.mrb[23].mxu1 }
 0x36b   : > { %v1505_v42 = vadd.f32 %v5667_v63, %v1497_v35  ;;  %v1498_v44 = vadd.f32 %v1481_v57, %v5695_v40 }
 0x36c   : > { %v4290_v46 = vmul.f32 -1.442695, %v1507_v13  ;;  %v1508_v50 = vadd.f32 %v5667_v63, %v1500_v37 }
 0x36d   : > { %v4288_v52 = vmul.f32 -1.442695, %v1505_v42  ;;  %v1506_v53 = vadd.f32 %v5667_v63, %v1498_v44 }
 0x36e   : > { %5010 = vpow2.f32 %v4290_v46  ;;  %v4291_v55 = vmul.f32 -1.442695, %v1508_v50 }
 0x36f   : > { %5012 = vpow2.f32 %v4288_v52  ;;  %v4289_v56 = vmul.f32 -1.442695, %v1506_v53 }
 0x370   : > { %v5003_v58 = vpop.eup %5002  ;;  %5014 = vpow2.f32 %v4291_v55 }
 0x371   : > { %v5005_v59 = vpop.eup %5004  ;;  %v1535_v60 = vadd.f32 1.0, %v5003_v58  ;;  %5016 = vpow2.f32 %v4289_v56 }
 0x372   : > { %v5007_v61 = vpop.eup %5006  ;;  %v1533_v15 = vadd.f32 1.0, %v5005_v59 }
 0x373   : > { %v5009_v18 = vpop.eup %5008  ;;  %5018 = vrcp.f32 %v1535_v60  ;;  %v1536_v57 = vadd.f32 1.0, %v5007_v61 }
 0x374   : > { %5020 = vrcp.f32 %v1533_v15  ;;  %v1534_v20 = vadd.f32 1.0, %v5009_v18 }
 0x375   : > { %5022 = vrcp.f32 %v1536_v57 }
 0x376   : > { %5024 = vrcp.f32 %v1534_v20 }
 0x378   : > { %v5011_v21 = vpop.eup %5010 }
 0x379   : > { %v5013_v23 = vpop.eup %5012  ;;  %v1539_v24 = vadd.f32 1.0, %v5011_v21 }
 0x37a   : > { %v5015_v25 = vpop.eup %5014  ;;  %v1537_v28 = vadd.f32 1.0, %v5013_v23 }
 0x37b   : > { %v5017_v29 = vpop.eup %5016  ;;  %5026 = vrcp.f32 %v1539_v24  ;;  %v1540_v30 = vadd.f32 1.0, %v5015_v25  ;;  %v4243_v25 = vld [vmem:[#allocation4] ss:$0 sm:$0xff] }
 0x37c   : > { %5028 = vrcp.f32 %v1537_v28  ;;  %v1538_v31 = vadd.f32 1.0, %v5017_v29 }
 0x37d   : > { %v5701_v32 = vpop.eup %5018  ;;  %5030 = vrcp.f32 %v1540_v30 }
 0x37e   : > { %v5703_v33 = vpop.eup %5020  ;;  %5032 = vrcp.f32 %v1538_v31  ;;  %v1559_v46 = vmul.f32 %v5701_v32, %v5463_v5 }
 0x37f   : > { %v5705_v35 = vpop.eup %5022  ;;  %v1557_v42 = vmul.f32 %v5703_v33, %v5454_v2 }
 0x380   : > { %v5707_v13 = vpop.eup %5024  ;;  %v1560_v37 = vmul.f32 %v5705_v35, %v5465_v6 }
 0x381   : > { %v1558_v44 = vmul.f32 %v5707_v13, %v5456_v3 }
 0x382   : > { %v1566_v52 = vpack.c.bf16 %v1560_v37, %v1559_v46 }
 0x383   : > { %v1565_v50 = vpack.c.bf16 %v1558_v44, %v1557_v42 }
 0x385   : > { %v5717_v53 = vpop.eup %5026  ;;  %4651 = vmatprep.mubr.msk.bf16.mxu0 %vm739_vm0, %v1565_v50 }
 0x386   : > { %v5720_v55 = vpop.eup %5028  ;;  %4652 = vmatmul.mubr.msk.bf16.vlgmr.msra.gmra.mrb[32].mxu0 %vm739_vm0, %v1566_v52  ;;  %v1563_v15 = vmul.f32 %v5717_v53, %v5483_v11 }
 0x387   : > { %v5723_v56 = vpop.eup %5030  ;;  %v1561_v60 = vmul.f32 %v5720_v55, %v5468_v7 }
 0x388   : > { %v5725_v58 = vpop.eup %5032  ;;  %v1564_v59 = vmul.f32 %v5723_v56, %v5485_v12 }
 0x389   : > { %v1562_v61 = vmul.f32 %v5725_v58, %v5470_v8 }
 0x38a   : > { %v1568_v57 = vpack.c.bf16 %v1564_v59, %v1563_v15 }
 0x38b   : > { %v1567_v18 = vpack.c.bf16 %v1562_v61, %v1561_v60 }
 0x38d   : > { %4655 = vmatprep.mubr.msk.bf16.mxu0 %vm739_vm0, %v1567_v18 }
 0x38e   : > { %4656 = vmatmul.mubr.msk.bf16.gmra.mrb[36].mxu0 %vm739_vm0, %v1568_v57 }
 0x38f   : > { %4673 = vmatprep.mubr.msk.bf16.mxu0 %vm5257_vm1, %v5256_v14 }
 0x459   : > { %v4653_v20 = vpop.f32.mrb[32].mxu0 }
 0x45a   : > { %1670 = vrot.lane.b32.xlu0 %v4653_v20, %s5259_s27  ;;  %v1627_v21 = vpop.f32.mrb[33].mxu0 }
 0x45b   : > { %v4654_v23 = vpop.f32.mrb[34].mxu0 }
 0x45c   : > { %v1630_v24 = vpop.f32.mrb[35].mxu0 }
 0x45d   : > { %1668 = vrot.lane.b32.xlu1 %v1630_v24, %s5259_s27 }
 0x45e   : > { %1666 = vrot.lane.b32.xlu0 %v1627_v21, %s5259_s27 }
 0x461   : > { %1672 = vrot.lane.b32.xlu1 %v4654_v23, %s5259_s27  ;;  %v4657_v28 = vpop.f32.mrb[36].mxu0 }
 0x462   : > { %1698 = vrot.lane.b32.xlu0 %v4243_v25, %s5259_s27  ;;  %v1643_v29 = vpop.f32.mrb[37].mxu0 }
 0x463   : > { %v4658_v30 = vpop.f32.mrb[38].mxu0 }
 0x464   : > { %v1646_v31 = vpop.f32.mrb[39].mxu0 }
 0x465   : > { %1674 = vrot.lane.b32.xlu1 %v1643_v29, %s5259_s27 }
 0x466   : > { %1676 = vrot.lane.b32.xlu0 %v1646_v31, %s5259_s27 }
 0x469   : > { %1678 = vrot.lane.b32.xlu1 %v4657_v28, %s5259_s27 }
 0x46a   : > { %1680 = vrot.lane.b32.xlu0 %v4658_v30, %s5259_s27 }
 0x46d   : > { %1733 = vrot.lane.b32.xlu1 %v5454_v2, %s5260_s29 }
 0x46e   : > { %1735 = vrot.lane.b32.xlu0 %v5456_v3, %s5260_s29 }
 0x471   : > { %1737 = vrot.lane.b32.xlu1 %v5463_v5, %s5260_s29 }
 0x472   : > { %1739 = vrot.lane.b32.xlu0 %v5465_v6, %s5260_s29 }
 0x475   : > { %1741 = vrot.lane.b32.xlu1 %v5468_v7, %s5260_s29 }
 0x476   : > { %1743 = vrot.lane.b32.xlu0 %v5470_v8, %s5260_s29 }
 0x4cc   : > { %v1671_v37 = vpop.permute.xlu0 %1670 }
 0x4cd   : > { %v1692_v2 = vadd.f32 %v5669_v4, %v1671_v37 }
 0x4cf   : > { %v1669_v42 = vpop.permute.xlu1 %1668 }
 0x4d0   : > { %v1667_v44 = vpop.permute.xlu0 %1666  ;;  %v1691_v52 = vadd.f32 %v1669_v42, %v5679_v22 }
 0x4d1   : > { %v1690_v5 = vadd.f32 %v1667_v44, %v5672_v17 }
 0x4d3   : > { %v1673_v46 = vpop.permute.xlu1 %1672 }
 0x4d4   : > { %v1693_v3 = vadd.f32 %v5675_v19, %v1673_v46  ;;  %v5762_v50 = vpop.permute.xlu0 %1698 }
 0x4d5   : > { %v1703_v6 = vadd.f32 %v5762_v50, %v1692_v2  ;;  %v1701_v8 = vadd.f32 %v5762_v50, %v1690_v5  ;;  %v1702_v4 = vadd.f32 %v5762_v50, %v1691_v52  ;;  %v1720_v2 = vsub.f32 1.0, %v5705_v35 }
 0x4d6   : > { %v1704_v7 = vadd.f32 %v5762_v50, %v1693_v3 }
 0x4d7   : > { %v1675_v59 = vpop.permute.xlu1 %1674  ;;  %5034 = vtanh.f32 %v1703_v6 }
 0x4d8   : > { %v1677_v60 = vpop.permute.xlu0 %1676  ;;  %5036 = vtanh.f32 %v1704_v7  ;;  %v1694_v19 = vadd.f32 %v1675_v59, %v5688_v34  ;;  %v1717_v59 = vsub.f32 1.0, %v5703_v33 }
 0x4d9   : > { %5038 = vtanh.f32 %v1701_v8  ;;  %v1695_v61 = vadd.f32 %v1677_v60, %v5695_v40  ;;  %v1718_v60 = vsub.f32 1.0, %v5707_v13 }
 0x4da   : > { %5040 = vtanh.f32 %v1702_v4  ;;  %v1705_v22 = vadd.f32 %v5762_v50, %v1694_v19 }
 0x4db   : > { %v1679_v17 = vpop.permute.xlu1 %1678  ;;  %v1706_v57 = vadd.f32 %v5762_v50, %v1695_v61 }
 0x4dc   : > { %v1681_v15 = vpop.permute.xlu0 %1680  ;;  %v1696_v18 = vadd.f32 %v5685_v9, %v1679_v17  ;;  %5042 = vtanh.f32 %v1705_v22 }
 0x4dd   : > { %v1697_v20 = vadd.f32 %v5691_v36, %v1681_v15  ;;  %5044 = vtanh.f32 %v1706_v57 }
 0x4de   : > { %v1707_v34 = vadd.f32 %v5762_v50, %v1696_v18 }
 0x4df   : > { %v1708_v40 = vadd.f32 %v5762_v50, %v1697_v20  ;;  %v1734_v30 = vpop.permute.xlu1 %1733 }
 0x4e0   : > { %5046 = vtanh.f32 %v1707_v34  ;;  %v1736_v31 = vpop.permute.xlu0 %1735  ;;  %v1757_v61 = vmul.f32 %v1734_v30, %v1717_v59  ;;  %v1722_v34 = vsub.f32 1.0, %v5725_v58  ;;  %v1724_v30 = vsub.f32 1.0, %v5723_v56 }
 0x4e1   : > { %v5035_v21 = vpop.eup %5034  ;;  %5048 = vtanh.f32 %v1708_v40  ;;  %v1758_v22 = vmul.f32 %v1736_v31, %v1718_v60 }
 0x4e2   : > { %v5037_v23 = vpop.eup %5036  ;;  %1777 = vrot.lane.b32.xlu1 %v5035_v21, %s5258_s28 }
 0x4e3   : > { %1779 = vrot.lane.b32.xlu0 %v5037_v23, %s5258_s28  ;;  %v5039_v24 = vpop.eup %5038  ;;  %v1738_v37 = vpop.permute.xlu1 %1737 }
 0x4e4   : > { %v5041_v25 = vpop.eup %5040  ;;  %v1740_v42 = vpop.permute.xlu0 %1739 }
 0x4e5   : > { %v1760_v52 = vmul.f32 %v1740_v42, %v1720_v2 }
 0x4e6   : > { %1773 = vrot.lane.b32.xlu1 %v5039_v24, %s5258_s28  ;;  %v5043_v9 = vpop.eup %5042 }
 0x4e7   : > { %1775 = vrot.lane.b32.xlu0 %v5041_v25, %s5258_s28  ;;  %v5045_v36 = vpop.eup %5044 }
 0x4e8   : > { %v1744_v44 = vpop.permute.xlu0 %1743 }
 0x4ea   : > { %1745 = vrot.lane.b32.xlu1 %v5483_v11, %s5260_s29  ;;  %v5047_v28 = vpop.eup %5046  ;;  %v1742_v11 = vpop.permute.xlu1 %1741 }
 0x4eb   : > { %1747 = vrot.lane.b32.xlu0 %v5485_v12, %s5260_s29  ;;  %v5049_v29 = vpop.eup %5048  ;;  %v1719_v12 = vsub.f32 1.0, %v5701_v32  ;;  %s642_s29 = scalar_lea.vmem %s6383_s3, %s4238_s21 }
 0x4ed   : > { %v1759_v3 = vmul.f32 %v1738_v37, %v1719_v12 }
 0x4ee   : > { %1781 = vrot.lane.b32.xlu1 %v5043_v9, %s5258_s28  ;;  %v1762_v9 = vmul.f32 %v1744_v44, %v1722_v34 }
 0x4ef   : > { %1783 = vrot.lane.b32.xlu0 %v5045_v36, %s5258_s28 }
 0x4f2   : > { %1785 = vrot.lane.b32.xlu1 %v5047_v28, %s5258_s28  ;;  %v1723_v28 = vsub.f32 1.0, %v5717_v53 }
 0x4f3   : > { %1787 = vrot.lane.b32.xlu0 %v5049_v29, %s5258_s28 }
 0x554   : > { %v1778_v46 = vpop.permute.xlu1 %1777 }
 0x555   : > { %v1799_v5 = vmul.f32 %v5701_v32, %v1778_v46  ;;  %v1780_v6 = vpop.permute.xlu0 %1779 }
 0x556   : > { %v1800_v7 = vmul.f32 %v5705_v35, %v1780_v6 }
 0x557   : > { %v5795_v8 = vadd.f32 %v1799_v5, %v1759_v3 }
 0x558   : > { %v5798_v4 = vadd.f32 %v1800_v7, %v1760_v52  ;;  %v1774_v19 = vpop.permute.xlu1 %1773 }
 0x559   : > { %v1797_v17 = vmul.f32 %v5703_v33, %v1774_v19  ;;  %v1776_v15 = vpop.permute.xlu0 %1775  ;;  %v1721_v33 = vsub.f32 1.0, %v5720_v55 }
 0x55a   : > { %v1798_v32 = vmul.f32 %v5707_v13, %v1776_v15  ;;  %v1814_v18 = vpack.c.bf16 %v5798_v4, %v5795_v8 }
 0x55b   : > { %v5804_v35 = vadd.f32 %v1797_v17, %v1757_v61  ;;  %v1761_v13 = vmul.f32 %v1742_v11, %v1721_v33 }
 0x55c   : > { %v5806_v57 = vadd.f32 %v1798_v32, %v1758_v22  ;;  %v1746_v20 = vpop.permute.xlu1 %1745  ;;  %1823 = vrot.lane.b32.xlu0 %v1814_v18, %s5258_s28 }
 0x55d   : > { %v1748_v21 = vpop.permute.xlu0 %1747  ;;  %v1763_v42 = vmul.f32 %v1746_v20, %v1723_v28 }
 0x55e   : > { %v1813_v23 = vpack.c.bf16 %v5806_v57, %v5804_v35  ;;  %v1764_v11 = vmul.f32 %v1748_v21, %v1724_v30 }
 0x560   : > { %v1782_v40 = vpop.permute.xlu1 %1781  ;;  %1821 = vrot.lane.b32.xlu1 %v1813_v23, %s5258_s28 }
 0x561   : > { %v1801_v24 = vmul.f32 %v5720_v55, %v1782_v40  ;;  %v1784_v25 = vpop.permute.xlu0 %1783 }
 0x562   : > { %v1802_v36 = vmul.f32 %v5725_v58, %v1784_v25 }
 0x563   : > { %v5817_v29 = vadd.f32 %v1801_v24, %v1761_v13 }
 0x564   : > { %v5820_v31 = vadd.f32 %v1802_v36, %v1762_v9  ;;  %v1786_v37 = vpop.permute.xlu1 %1785 }
 0x565   : > { %v1803_v12 = vmul.f32 %v5717_v53, %v1786_v37  ;;  %v1788_v2 = vpop.permute.xlu0 %1787 }
 0x566   : > { %v1804_v55 = vmul.f32 %v5723_v56, %v1788_v2  ;;  %v1815_v44 = vpack.c.bf16 %v5820_v31, %v5817_v29 }
 0x567   : > { %v5826_v58 = vadd.f32 %v1803_v12, %v1763_v42 }
 0x568   : > { %v5828_v46 = vadd.f32 %v1804_v55, %v1764_v11  ;;  %1825 = vrot.lane.b32.xlu1 %v1815_v44, %s5258_s28 }
 0x56a   : > { %v1816_v3 = vpack.c.bf16 %v5828_v46, %v5826_v58 }
 0x56c   : > { %1827 = vrot.lane.b32.xlu0 %v1816_v3, %s5258_s28 }
 0x5ce   : > { %v5836_v53 = vpop.permute.xlu0 %1823 }
 0x5d2   : > { %v5834_v5 = vpop.permute.xlu1 %1821 }
 0x5d3   : > { %4663 = vmatprep.mubr.msk.bf16.mxu1 %vm739_vm0, %v5834_v5 }
 0x5d4   : > { %4664 = vmatmul.mubr.msk.bf16.vlgmr.msra.gmra.mrb[24].mxu1 %vm739_vm0, %v5836_v53 }
 0x5da   : > { %v5842_v56 = vpop.permute.xlu1 %1825 }
 0x5db   : > { %4667 = vmatprep.mubr.msk.bf16.mxu1 %vm739_vm0, %v5842_v56 }
 0x5de   : > { %v5846_v6 = vpop.permute.xlu0 %1827 }
 0x5df   : > { %4668 = vmatmul.mubr.msk.bf16.gmra.mrb[28].mxu1 %vm739_vm0, %v5846_v6 }
 0x5e0   : > { %4685 = vmatprep.mubr.msk.bf16.mxu1 %vm5257_vm1, %v5256_v14 }
 0x6a7   : > { %v4665_v52 = vpop.f32.mrb[24].mxu1 }
 0x6a8   : > { %v1875_v7 = vpop.f32.mrb[25].mxu1  ;;  %v1884_v60 = vadd.f32 %v4665_v52, %v5517_v16 }
 0x6a9   : > { %v4666_v59 = vpop.f32.mrb[26].mxu1  ;;  %v1876_v17 = vadd.f32 %v5517_v16, %v1875_v7 }
 0x6aa   : > { %v1887_v19 = vadd.f32 %v4666_v59, %v5517_v16  ;;  %v1878_v61 = vpop.f32.mrb[27].mxu1 }
 0x6ab   : > { %v1879_v15 = vadd.f32 %v5517_v16, %v1878_v61 }
 0x6ac   : > { %v1907_v22 = vpack.c.bf16 %v1887_v19, %v1884_v60 }
 0x6ad   : > { %v1906_v32 = vpack.c.bf16 %v1879_v15, %v1876_v17 }
 0x6ae   : > { %2120 = vrot.lane.b32.xlu0 %v1907_v22, %s5258_s28 }
 0x6af   : > { %2075 = vrot.lane.b32.xlu1 %v1906_v32, %s5258_s28  ;;  %4672 = vmatpush3.bf16.msra.mxu0 %v1906_v32 }
 0x6b0   : > { %4677 = vmatprep.subr.bf16.mxu0 %v5256_v14 }
 0x6b2   : > { %v4669_v18 = vpop.f32.mrb[28].mxu1  ;;  %4674 = vmatmul.mubr.msk.bf16.vlgmr.msra.gmra.mrb[40].mxu0 %vm826_vm2, %v5527_v27 }
 0x6b3   : > { %v1891_v20 = vpop.f32.mrb[29].mxu1  ;;  %4678 = vmatpush3.bf16.msra.mxu0 %v1907_v22  ;;  %4679 = vmatprep.mubr.msk.bf16.mxu0 %vm5257_vm1, %v5256_v14  ;;  %v1900_v23 = vadd.f32 %v4669_v18, %v5517_v16  ;;  %v5162_v22 = vld [vmem:[%s6384_s4] sm:$0xff]  }
 0x6b4   : > { %v4670_v21 = vpop.f32.mrb[30].mxu1  ;;  %4689 = vmatprep.subr.bf16.mxu0 %v5256_v14  ;;  %v1892_v40 = vadd.f32 %v5517_v16, %v1891_v20 }
 0x6b5   : > { %v1903_v33 = vadd.f32 %v4670_v21, %v5517_v16  ;;  %v1894_v34 = vpop.f32.mrb[31].mxu1 }
 0x6b6   : > { %v1895_v13 = vadd.f32 %v5517_v16, %v1894_v34 }
 0x6b7   : > { %v1909_v24 = vpack.c.bf16 %v1903_v33, %v1900_v23 }
 0x6b8   : > { %v1908_v25 = vpack.c.bf16 %v1895_v13, %v1892_v40 }
 0x6b9   : > { %2210 = vrot.lane.b32.xlu0 %v1909_v24, %s5258_s28 }
 0x6ba   : > { %4680 = vmatmul.mubr.msk.bf16.vlgmr.msra.gmra.mrb[44].mxu0 %vm826_vm2, %v5524_v26  ;;  %2165 = vrot.lane.b32.xlu1 %v1908_v25, %s5258_s28 }
 0x6bb   : > { %4690 = vmatpush3.bf16.msra.mxu0 %v1909_v24  ;;  %4684 = vmatpush3.bf16.msra.mxu1 %v1908_v25  ;;  %v5163_v24 = vld [vmem:[%s6384_s4 + $0x8] sm:$0xff]  }
 0x6bc   : > { %4691 = vmatprep.mubr.msk.bf16.mxu0 %vm5257_vm1, %v5256_v14  ;;  %4701 = vmatprep.subr.bf16.mxu0 %v5256_v14 }
 0x6bd   : > { %2555 = vrot.lane.b32.xlu0 %v5806_v57, %s5258_s28  ;;  %4695 = vmatprep.subr.bf16.mxu1 %v5256_v14 }
 0x6be   : > { %2553 = vrot.lane.b32.xlu1 %v5804_v35, %s5258_s28  ;;  %4686 = vmatmul.mubr.msk.bf16.vlgmr.msra.gmra.mrb[32].mxu1 %vm826_vm2, %v5546_v38 }
 0x6bf   : > { %4697 = vmatprep.mubr.msk.bf16.mxu1 %vm5257_vm1, %v5256_v14 }
 0x6c1   : > { %2559 = vrot.lane.b32.xlu0 %v5798_v4, %s5258_s28 }
 0x6c2   : > { %2557 = vrot.lane.b32.xlu1 %v5795_v8, %s5258_s28  ;;  %4692 = vmatmul.mubr.msk.bf16.vlgmr.msra.gmra.mrb[48].mxu0 %vm826_vm2, %v5549_v39 }
 0x6c3   : > { %4703 = vmatprep.mubr.msk.bf16.mxu0 %vm5257_vm1, %v5256_v14 }
 0x6c5   : > { %2563 = vrot.lane.b32.xlu0 %v5820_v31, %s5258_s28 }
 0x6c6   : > { %2561 = vrot.lane.b32.xlu1 %v5817_v29, %s5258_s28 }
 0x6c9   : > { %2567 = vrot.lane.b32.xlu0 %v5828_v46, %s5258_s28 }
 0x6ca   : > { %2565 = vrot.lane.b32.xlu1 %v5826_v58, %s5258_s28 }
 0x720   : > { %v2121_v16 = vpop.permute.xlu0 %2120 }
 0x721   : > { %v2076_v26 = vpop.permute.xlu1 %2075  ;;  %4702 = vmatpush3.bf16.msra.mxu0 %v2121_v16 }
 0x722   : > { %4696 = vmatpush3.bf16.msra.mxu1 %v2076_v26  ;;  %4713 = vmatprep.subr.bf16.mxu0 %v5256_v14 }
 0x723   : > { %4707 = vmatprep.subr.bf16.mxu1 %v5256_v14 }
 0x724   : > { %4704 = vmatmul.mubr.msk.bf16.vlgmr.msra.gmra.mrb[52].mxu0 %vm826_vm2, %v5570_v43 }
 0x725   : > { %4698 = vmatmul.mubr.msk.bf16.vlgmr.msra.gmra.mrb[36].mxu1 %vm826_vm2, %v5564_v41  ;;  %4715 = vmatprep.mubr.msk.bf16.mxu0 %vm5257_vm1, %v5256_v14 }
 0x726   : > { %4709 = vmatprep.mubr.msk.bf16.mxu1 %vm5257_vm1, %v5256_v14 }
 0x72b   : > { %v2211_v27 = vpop.permute.xlu0 %2210 }
 0x72c   : > { %v2166_v38 = vpop.permute.xlu1 %2165  ;;  %4714 = vmatpush3.bf16.msra.mxu0 %v2211_v27 }
 0x72d   : > { %4708 = vmatpush3.bf16.msra.mxu1 %v2166_v38  ;;  %4743 = vmatprep.subr.bf16.mxu0 %v5608_v51 }
 0x72e   : > { %4719 = vmatprep.subr.bf16.mxu1 %v5594_v48 }
 0x72f   : > { %4716 = vmatmul.mubr.msk.bf16.vlgmr.msra.gmra.mrb[56].mxu0 %vm826_vm2, %v5585_v47 }
 0x730   : > { %4710 = vmatmul.mubr.msk.bf16.vlgmr.msra.gmra.mrb[40].mxu1 %vm826_vm2, %v5578_v45  ;;  %4744 = vmatpush3.bf16.msra.mxu0 %v5608_v51 }
 0x731   : > { %4747 = vmatprep.mubr.msk.bf16.mxu0 %vm739_vm0, %v5834_v5  ;;  %4745 = vmatprep.subr.bf16.mxu0 %v5621_v62 }
 0x732   : > { %4720 = vmatpush3.bf16.msra.mxu1 %v5594_v48 }
 0x733   : > { %4721 = vmatprep.subr.bf16.mxu1 %v5601_v49 }
 0x734   : > { %4746 = vmatpush3.bf16.msra.mxu0 %v5621_v62 }
 0x735   : > { %4755 = vmatprep.subr.bf16.mxu0 %v5655_v0 }
 0x736   : > { %4722 = vmatpush3.bf16.msra.mxu1 %v5601_v49 }
 0x737   : > { %4748 = vmatmul.mubr.msk.bf16.vlgmr.msra.gmra.mrb[60].mxu0 %vm739_vm0, %v5836_v53  ;;  %4731 = vmatprep.subr.bf16.mxu1 %v5613_v54 }
 0x738   : > { %4751 = vmatprep.mubr.msk.bf16.mxu0 %vm739_vm0, %v5842_v56  ;;  %4756 = vmatpush3.bf16.msra.mxu0 %v5655_v0 }
 0x739   : > { %4757 = vmatprep.subr.bf16.mxu0 %v5661_v1 }
 0x73c   : > { %4758 = vmatpush3.bf16.msra.mxu0 %v5661_v1 }
 0x73d   : > { %4779 = vmatprep.subr.bf16.mxu0 %v5256_v14 }
 0x73f   : > { %4752 = vmatmul.mubr.msk.bf16.gmra.mrb[64].mxu0 %vm739_vm0, %v5846_v6 }
 0x785   : > { %v1944_v39 = vpop.f32.mrb[40].mxu0 }
 0x786   : > { %v4675_v41 = vpop.f32.mrb[41].mxu0 }
 0x787   : > { %v1947_v43 = vpop.f32.mrb[42].mxu0 }
 0x788   : > { %v2254_v45 = vpack.c.bf16 %v1947_v43, %v1944_v39  ;;  %v4676_v47 = vpop.f32.mrb[43].mxu0 }
 0x78d   : > { %v1985_v48 = vpop.f32.mrb[44].mxu0 }
 0x78e   : > { %v4681_v49 = vpop.f32.mrb[45].mxu0 }
 0x78f   : > { %v1988_v51 = vpop.f32.mrb[46].mxu0 }
 0x790   : > { %v2255_v62 = vpack.c.bf16 %v1988_v51, %v1985_v48  ;;  %v4682_v9 = vpop.f32.mrb[47].mxu0 }
 0x791   : > { %v2026_v0 = vpop.f32.mrb[32].mxu1 }
 0x792   : > { %v4687_v36 = vpop.f32.mrb[33].mxu1 }
 0x793   : > { %v2029_v28 = vpop.f32.mrb[34].mxu1 }
 0x794   : > { %v2256_v30 = vpack.c.bf16 %v2029_v28, %v2026_v0  ;;  %v4688_v1 = vpop.f32.mrb[35].mxu1 }
 0x795   : > { %v2067_v37 = vpop.f32.mrb[48].mxu0 }
 0x796   : > { %v4693_v42 = vpop.f32.mrb[49].mxu0 }
 0x797   : > { %v2070_v12 = vpop.f32.mrb[50].mxu0 }
 0x798   : > { %v2257_v2 = vpack.c.bf16 %v2070_v12, %v2067_v37  ;;  %v4694_v11 = vpop.f32.mrb[51].mxu0 }
 0x7f7   : > { %v2157_v55 = vpop.f32.mrb[52].mxu0 }
 0x7f8   : > { %v2112_v44 = vpop.f32.mrb[36].mxu1  ;;  %v4705_v3 = vpop.f32.mrb[53].mxu0 }
 0x7f9   : > { %v4699_v5 = vpop.f32.mrb[37].mxu1  ;;  %v2160_v53 = vpop.f32.mrb[54].mxu0 }
 0x7fa   : > { %v2115_v56 = vpop.f32.mrb[38].mxu1  ;;  %v2259_v6 = vpack.c.bf16 %v2160_v53, %v2157_v55  ;;  %v4706_v52 = vpop.f32.mrb[55].mxu0 }
 0x7fb   : > { %v2258_v7 = vpack.c.bf16 %v2115_v56, %v2112_v44  ;;  %v4700_v59 = vpop.f32.mrb[39].mxu1 }
 0x7fd   : > { %4723 = vmatprep.mubr.msk.bf16.mxu1 %vm739_vm0, %v2258_v7 }
 0x7fe   : > { %4724 = vmatmul.mubr.msk.bf16.vlgmr.msra.gmra.mrb[44].mxu1 %vm739_vm0, %v2259_v6 }
 0x7ff   : > { %4732 = vmatpush3.bf16.msra.mxu1 %v5613_v54 }
 0x800   : > { %4733 = vmatprep.subr.bf16.mxu1 %v5635_v10 }
 0x802   : > { %v2247_v60 = vpop.f32.mrb[56].mxu0 }
 0x803   : > { %v2202_v19 = vpop.f32.mrb[40].mxu1  ;;  %v4717_v61 = vpop.f32.mrb[57].mxu0  ;;  %4734 = vmatpush3.bf16.msra.mxu1 %v5635_v10 }
 0x804   : > { %v4711_v17 = vpop.f32.mrb[41].mxu1  ;;  %v2250_v15 = vpop.f32.mrb[58].mxu0  ;;  %4767 = vmatprep.subr.bf16.mxu1 %v5162_v22 }
 0x805   : > { %v2261_v32 = vpack.c.bf16 %v2250_v15, %v2247_v60  ;;  %v2205_v18 = vpop.f32.mrb[42].mxu1  ;;  %v4718_v20 = vpop.f32.mrb[59].mxu0 }
 0x806   : > { %v2260_v21 = vpack.c.bf16 %v2205_v18, %v2202_v19  ;;  %v4712_v23 = vpop.f32.mrb[43].mxu1  ;;  %v2556_v18 = vpop.permute.xlu0 %2555 }
 0x808   : > { %4727 = vmatprep.mubr.msk.bf16.mxu1 %vm739_vm0, %v2260_v21 }
 0x809   : > { %4728 = vmatmul.mubr.msk.bf16.gmra.mrb[48].mxu1 %vm739_vm0, %v2261_v32 }
 0x80a   : > { %4735 = vmatprep.mubr.msk.bf16.mxu1 %vm739_vm0, %v2254_v45  ;;  %v4749_v54 = vpop.f32.mrb[60].mxu0 }
 0x80b   : > { %v2450_v10 = vpop.f32.mrb[61].mxu0 }
 0x80c   : > { %v4750_v33 = vpop.f32.mrb[62].mxu0 }
 0x80d   : > { %v2453_v34 = vpop.f32.mrb[63].mxu0 }
 0x811   : > { %4736 = vmatmul.mubr.msk.bf16.vlgmr.msra.gmra.mrb[44].mxu1 %vm739_vm0, %v2255_v62 }
 0x812   : > { %4739 = vmatprep.mubr.msk.bf16.mxu1 %vm739_vm0, %v2256_v30  ;;  %v4753_v40 = vpop.f32.mrb[64].mxu0  ;;  %4768 = vmatpush3.bf16.msra.mxu1 %v5162_v22 }
 0x813   : > { %v2466_v13 = vpop.f32.mrb[65].mxu0  ;;  %4769 = vmatprep.subr.bf16.mxu1 %v5163_v24 }
 0x814   : > { %v4754_v25 = vpop.f32.mrb[66].mxu0 }
 0x815   : > { %v2469_v16 = vpop.f32.mrb[67].mxu0 }
 0x816   : > { %4770 = vmatpush3.bf16.msra.mxu1 %v5163_v24 }
 0x817   : > { %4791 = vmatprep.subr.bf16.mxu1 %v5256_v14 }
 0x819   : > { %4740 = vmatmul.mubr.msk.bf16.gmra.mrb[48].mxu1 %vm739_vm0, %v2257_v2 }
 0x8e4   : > { %v5954_v26 = vpop.f32.mrb[44].mxu1 }
 0x8e5   : > { %v2483_v27 = vadd.f32 %v4749_v54, %v5954_v26  ;;  %v5957_v38 = vpop.f32.mrb[45].mxu1 }
 0x8e6   : > { %v2481_v39 = vadd.f32 %v2450_v10, %v5957_v38  ;;  %v5960_v41 = vpop.f32.mrb[46].mxu1 }
 0x8e7   : > { %v2491_v43 = vadd.f32 %v5667_v63, %v2483_v27  ;;  %v2484_v45 = vadd.f32 %v4750_v33, %v5960_v41  ;;  %v5964_v47 = vpop.f32.mrb[47].mxu1 }
 0x8e8   : > { %v2489_v48 = vadd.f32 %v5667_v63, %v2481_v39  ;;  %v2482_v49 = vadd.f32 %v2453_v34, %v5964_v47  ;;  %v2560_v34 = vpop.permute.xlu0 %2559 }
 0x8e9   : > { %v4324_v51 = vmul.f32 -1.442695, %v2491_v43  ;;  %v2492_v62 = vadd.f32 %v5667_v63, %v2484_v45 }
 0x8ea   : > { %v4322_v9 = vmul.f32 -1.442695, %v2489_v48  ;;  %v2490_v0 = vadd.f32 %v5667_v63, %v2482_v49 }
 0x8eb   : > { %5050 = vpow2.f32 %v4324_v51  ;;  %v4325_v36 = vmul.f32 -1.442695, %v2492_v62 }
 0x8ec   : > { %5052 = vpow2.f32 %v4322_v9  ;;  %v4323_v28 = vmul.f32 -1.442695, %v2490_v0  ;;  %v5970_v30 = vpop.f32.mrb[48].mxu1  ;;  %v2564_v45 = vpop.permute.xlu0 %2563 }
 0x8ed   : > { %5054 = vpow2.f32 %v4325_v36  ;;  %v2487_v1 = vadd.f32 %v4753_v40, %v5970_v30  ;;  %v5973_v37 = vpop.f32.mrb[49].mxu1 }
 0x8ee   : > { %5056 = vpow2.f32 %v4323_v28  ;;  %v2485_v42 = vadd.f32 %v2466_v13, %v5973_v37  ;;  %v5976_v12 = vpop.f32.mrb[50].mxu1 }
 0x8ef   : > { %v2495_v2 = vadd.f32 %v5667_v63, %v2487_v1  ;;  %v2488_v11 = vadd.f32 %v4754_v25, %v5976_v12  ;;  %v5980_v55 = vpop.f32.mrb[51].mxu1 }
 0x8f0   : > { %v2493_v44 = vadd.f32 %v5667_v63, %v2485_v42  ;;  %v2486_v3 = vadd.f32 %v2469_v16, %v5980_v55  ;;  %v2568_v42 = vpop.permute.xlu0 %2567 }
 0x8f1   : > { %v4328_v5 = vmul.f32 -1.442695, %v2495_v2  ;;  %v2496_v53 = vadd.f32 %v5667_v63, %v2488_v11 }
 0x8f2   : > { %v4326_v56 = vmul.f32 -1.442695, %v2493_v44  ;;  %v2494_v6 = vadd.f32 %v5667_v63, %v2486_v3  ;;  %v2554_v63 = vpop.permute.xlu1 %2553 }
 0x8f3   : > { %5058 = vpow2.f32 %v4328_v5  ;;  %v4329_v52 = vmul.f32 -1.442695, %v2496_v53 }
 0x8f4   : > { %5060 = vpow2.f32 %v4326_v56  ;;  %v4327_v7 = vmul.f32 -1.442695, %v2494_v6 }
 0x8f5   : > { %v5051_v59 = vpop.eup %5050  ;;  %5062 = vpow2.f32 %v4329_v52 }
 0x8f6   : > { %v5053_v60 = vpop.eup %5052  ;;  %v2523_v19 = vadd.f32 1.0, %v5051_v59  ;;  %5064 = vpow2.f32 %v4327_v7  ;;  %v2558_v25 = vpop.permute.xlu1 %2557 }
 0x8f7   : > { %v5055_v61 = vpop.eup %5054  ;;  %v2521_v17 = vadd.f32 1.0, %v5053_v60 }
 0x8f8   : > { %v5057_v15 = vpop.eup %5056  ;;  %5066 = vrcp.f32 %v2523_v19  ;;  %v2524_v22 = vadd.f32 1.0, %v5055_v61 }
 0x8f9   : > { %5068 = vrcp.f32 %v2521_v17  ;;  %v2522_v32 = vadd.f32 1.0, %v5057_v15 }
 0x8fa   : > { %5070 = vrcp.f32 %v2524_v22  ;;  %v2562_v62 = vpop.permute.xlu1 %2561 }
 0x8fb   : > { %5072 = vrcp.f32 %v2522_v32 }
 0x8fd   : > { %v5059_v20 = vpop.eup %5058 }
 0x8fe   : > { %v5061_v21 = vpop.eup %5060  ;;  %v2527_v23 = vadd.f32 1.0, %v5059_v20  ;;  %v2566_v44 = vpop.permute.xlu1 %2565 }
 0x8ff   : > { %v5063_v54 = vpop.eup %5062  ;;  %v2525_v10 = vadd.f32 1.0, %v5061_v21 }
 0x900   : > { %v5065_v33 = vpop.eup %5064  ;;  %5074 = vrcp.f32 %v2527_v23  ;;  %v2528_v40 = vadd.f32 1.0, %v5063_v54 }
 0x901   : > { %5076 = vrcp.f32 %v2525_v10  ;;  %v2526_v13 = vadd.f32 1.0, %v5065_v33 }
 0x902   : > { %v5986_v24 = vpop.eup %5066  ;;  %5078 = vrcp.f32 %v2528_v40 }
 0x903   : > { %v5988_v16 = vpop.eup %5068  ;;  %5080 = vrcp.f32 %v2526_v13  ;;  %v2579_v51 = vmul.f32 %v5986_v24, %v2558_v25 }
 0x904   : > { %v5990_v27 = vpop.eup %5070  ;;  %v2577_v48 = vmul.f32 %v5988_v16, %v2554_v63 }
 0x905   : > { %v5992_v39 = vpop.eup %5072  ;;  %v2580_v43 = vmul.f32 %v5990_v27, %v2560_v34 }
 0x906   : > { %v2578_v49 = vmul.f32 %v5992_v39, %v2556_v18 }
 0x907   : > { %v2586_v0 = vpack.c.bf16 %v2580_v43, %v2579_v51 }
 0x908   : > { %v2585_v9 = vpack.c.bf16 %v2578_v49, %v2577_v48 }
 0x90a   : > { %v5998_v36 = vpop.eup %5074  ;;  %4759 = vmatprep.mubr.msk.bf16.mxu0 %vm739_vm0, %v2585_v9 }
 0x90b   : > { %v6001_v28 = vpop.eup %5076  ;;  %4760 = vmatmul.mubr.msk.bf16.vlgmr.msra.gmra.mrb[68].mxu0 %vm739_vm0, %v2586_v0  ;;  %v2583_v53 = vmul.f32 %v5998_v36, %v2566_v44  ;;  %v2722_v44 = vsub.f32 1.0, %v5988_v16 }
 0x90c   : > { %v6004_v1 = vpop.eup %5078  ;;  %v2581_v3 = vmul.f32 %v6001_v28, %v2562_v62 }
 0x90d   : > { %v6006_v2 = vpop.eup %5080  ;;  %v2584_v11 = vmul.f32 %v6004_v1, %v2568_v42 }
 0x90e   : > { %v2582_v5 = vmul.f32 %v6006_v2, %v2564_v45 }
 0x90f   : > { %v2588_v6 = vpack.c.bf16 %v2584_v11, %v2583_v53 }
 0x910   : > { %v2587_v56 = vpack.c.bf16 %v2582_v5, %v2581_v3  ;;  %v2723_v3 = vsub.f32 1.0, %v5992_v39 }
 0x912   : > { %4763 = vmatprep.mubr.msk.bf16.mxu0 %vm739_vm0, %v2587_v56 }
 0x913   : > { %4764 = vmatmul.mubr.msk.bf16.gmra.mrb[72].mxu0 %vm739_vm0, %v2588_v6  ;;  %v2724_v6 = vsub.f32 1.0, %v5986_v24 }
 0x914   : > { %4781 = vmatprep.mubr.msk.bf16.mxu0 %vm5257_vm1, %v5256_v14 }
 0x9de   : > { %v4761_v52 = vpop.f32.mrb[68].mxu0 }
 0x9df   : > { %v2635_v7 = vpop.f32.mrb[69].mxu0 }
 0x9e0   : > { %2674 = vrot.lane.b32.xlu1 %v2635_v7, %s5259_s27  ;;  %v4762_v59 = vpop.f32.mrb[70].mxu0  ;;  %v2730_v7 = vmul.f32 %v2722_v44, %v5804_v35  ;;  %v2726_v35 = vsub.f32 1.0, %v6001_v28 }
 0x9e1   : > { %v2638_v60 = vpop.f32.mrb[71].mxu0 }
 0x9e2   : > { %2676 = vrot.lane.b32.xlu0 %v2638_v60, %s5259_s27 }
 0x9e4   : > { %2678 = vrot.lane.b32.xlu1 %v4761_v52, %s5259_s27  ;;  %v2725_v52 = vsub.f32 1.0, %v5990_v27 }
 0x9e6   : > { %2680 = vrot.lane.b32.xlu0 %v4762_v59, %s5259_s27  ;;  %v4765_v19 = vpop.f32.mrb[72].mxu0  ;;  %v2731_v59 = vmul.f32 %v2723_v3, %v5806_v57 }
 0x9e7   : > { %v2651_v61 = vpop.f32.mrb[73].mxu0 }
 0x9e8   : > { %2682 = vrot.lane.b32.xlu1 %v2651_v61, %s5259_s27  ;;  %v4766_v17 = vpop.f32.mrb[74].mxu0 }
 0x9e9   : > { %v2654_v15 = vpop.f32.mrb[75].mxu0 }
 0x9ea   : > { %2684 = vrot.lane.b32.xlu0 %v2654_v15, %s5259_s27 }
 0x9ec   : > { %2686 = vrot.lane.b32.xlu1 %v4765_v19, %s5259_s27 }
 0x9ee   : > { %2688 = vrot.lane.b32.xlu0 %v4766_v17, %s5259_s27 }
 0xa52   : > { %v2675_v22 = vpop.permute.xlu1 %2674 }
 0xa53   : > { %v2698_v32 = vadd.f32 %v2675_v22, %v5957_v38  ;;  %v2733_v22 = vmul.f32 %v2725_v52, %v5798_v4  ;;  %v2728_v4 = vsub.f32 1.0, %v5998_v36 }
 0xa54   : > { %v2677_v18 = vpop.permute.xlu0 %2676 }
 0xa55   : > { %v2706_v63 = vadd.f32 %v2698_v32, %v5762_v50  ;;  %v2699_v20 = vadd.f32 %v2677_v18, %v5964_v47 }
 0xa56   : > { %v2679_v21 = vpop.permute.xlu1 %2678 }
 0xa57   : > { %5082 = vtanh.f32 %v2706_v63  ;;  %v2707_v23 = vadd.f32 %v2699_v20, %v5762_v50  ;;  %v2700_v54 = vadd.f32 %v5954_v26, %v2679_v21 }
 0xa58   : > { %v2681_v10 = vpop.permute.xlu0 %2680 }
 0xa59   : > { %5084 = vtanh.f32 %v2707_v23  ;;  %v2708_v33 = vadd.f32 %v2700_v54, %v5762_v50  ;;  %v2701_v34 = vadd.f32 %v5960_v41, %v2681_v10  ;;  %v2734_v23 = vmul.f32 %v2726_v35, %v5817_v29 }
 0xa5a   : > { %v2683_v40 = vpop.permute.xlu1 %2682 }
 0xa5b   : > { %5086 = vtanh.f32 %v2708_v33  ;;  %v2709_v38 = vadd.f32 %v2701_v34, %v5762_v50  ;;  %v2702_v13 = vadd.f32 %v2683_v40, %v5973_v37 }
 0xa5c   : > { %v2685_v25 = vpop.permute.xlu0 %2684 }
 0xa5d   : > { %5088 = vtanh.f32 %v2709_v38  ;;  %v2710_v47 = vadd.f32 %v2702_v13, %v5762_v50  ;;  %v2703_v43 = vadd.f32 %v2685_v25, %v5980_v55  ;;  %v2736_v25 = vmul.f32 %v2728_v4, %v5826_v58  ;;  %v5177_v4 = vld [vmem:[%s6389_s9] sm:$0xff]  }
 0xa5e   : > { %v2687_v45 = vpop.permute.xlu1 %2686 }
 0xa5f   : > { %5090 = vtanh.f32 %v2710_v47  ;;  %v2711_v26 = vadd.f32 %v2703_v43, %v5762_v50  ;;  %v2704_v48 = vadd.f32 %v5970_v30, %v2687_v45 }
 0xa60   : > { %v2689_v49 = vpop.permute.xlu0 %2688 }
 0xa61   : > { %v5083_v41 = vpop.eup %5082  ;;  %5092 = vtanh.f32 %v2711_v26  ;;  %v2712_v51 = vadd.f32 %v2704_v48, %v5762_v50  ;;  %v2705_v62 = vadd.f32 %v5976_v12, %v2689_v49 }
 0xa62   : > { %2746 = vrot.lane.b32.xlu1 %v5083_v41, %s5258_s28  ;;  %v5164_v41 = vld [vmem:[%s6385_s5] ss:$0 sm:$0xff] }
 0xa63   : > { %v5085_v37 = vpop.eup %5084  ;;  %5094 = vtanh.f32 %v2712_v51  ;;  %v2713_v9 = vadd.f32 %v2705_v62, %v5762_v50 }
 0xa64   : > { %2748 = vrot.lane.b32.xlu0 %v5085_v37, %s5258_s28 }
 0xa65   : > { %v5087_v55 = vpop.eup %5086  ;;  %5096 = vtanh.f32 %v2713_v9 }
 0xa66   : > { %2750 = vrot.lane.b32.xlu1 %v5087_v55, %s5258_s28 }
 0xa67   : > { %v5089_v30 = vpop.eup %5088 }
 0xa68   : > { %2752 = vrot.lane.b32.xlu0 %v5089_v30, %s5258_s28 }
 0xa69   : > { %v5091_v0 = vpop.eup %5090 }
 0xa6a   : > { %2754 = vrot.lane.b32.xlu1 %v5091_v0, %s5258_s28 }
 0xa6b   : > { %v5093_v42 = vpop.eup %5092 }
 0xa6c   : > { %2756 = vrot.lane.b32.xlu0 %v5093_v42, %s5258_s28 }
 0xa6d   : > { %v5095_v12 = vpop.eup %5094 }
 0xa6e   : > { %2758 = vrot.lane.b32.xlu1 %v5095_v12, %s5258_s28 }
 0xa6f   : > { %v5097_v11 = vpop.eup %5096 }
 0xa70   : > { %2760 = vrot.lane.b32.xlu0 %v5097_v11, %s5258_s28 }
 0xad4   : > { %v2747_v5 = vpop.permute.xlu1 %2746 }
 0xad5   : > { %v2770_v53 = vmul.f32 %v5988_v16, %v2747_v5  ;;  %v2732_v16 = vmul.f32 %v2724_v6, %v5795_v8 }
 0xad6   : > { %v2749_v56 = vpop.permute.xlu0 %2748 }
 0xad7   : > { %v2771_v60 = vmul.f32 %v5992_v39, %v2749_v56  ;;  %v6056_v61 = vadd.f32 %v2770_v53, %v2730_v7  ;;  %v2727_v39 = vsub.f32 1.0, %v6006_v2  ;;  %v5165_v53 = vld [vmem:[%s5503_s20] sm:$0xff]  }
 0xad8   : > { %v2751_v19 = vpop.permute.xlu1 %2750 }
 0xad9   : > { %v6058_v17 = vadd.f32 %v2771_v60, %v2731_v59  ;;  %v2772_v15 = vmul.f32 %v5986_v24, %v2751_v19  ;;  %v2735_v54 = vmul.f32 %v2727_v39, %v5820_v31  ;;  %v5166_v59 = vld [vmem:[%s5503_s20 + $0x8] sm:$0xff]   ;;  %v5167_v60 = vld [vmem:[%s5503_s20 + $0x10] sm:$0xff]   ;;  %v5168_v19 = vld [vmem:[%s5503_s20 + $0x18] sm:$0xff]  }
 0xada   : > { %v2753_v32 = vpop.permute.xlu0 %2752  ;;  %v5172_v39 = vld [vmem:[%s6387_s7] sm:$0xff]  }
 0xadb   : > { %v2773_v18 = vmul.f32 %v5990_v27, %v2753_v32  ;;  %v2786_v57 = vpack.c.bf16 %v6058_v17, %v6056_v61  ;;  %v6068_v20 = vadd.f32 %v2772_v15, %v2732_v16  ;;  %v2729_v27 = vsub.f32 1.0, %v6004_v1  ;;  %v5170_v32 = vld [vmem:[%s5512_s23] sm:$0xff]  }
 0xadc   : > { %v2755_v63 = vpop.permute.xlu1 %2754 }
 0xadd   : > { %v6070_v21 = vadd.f32 %v2773_v18, %v2733_v22  ;;  %v2774_v24 = vmul.f32 %v6001_v28, %v2755_v63  ;;  %2794 = vrot.lane.b32.xlu1 %v2786_v57, %s5258_s28  ;;  %v2737_v29 = vmul.f32 %v2729_v27, %v5828_v46  ;;  %v5169_v22 = vld [vmem:[%s5512_s23 + $0x8] sm:$0xff]   ;;  %v5171_v57 = vld [vmem:[%s6388_s8] sm:$0xff]   ;;  %v5173_v63 = vld [vmem:[%s5512_s23 + $0x18] sm:$0xff]  }
 0xade   : > { %v2757_v8 = vpop.permute.xlu0 %2756  ;;  %v5178_v27 = vld [vmem:[%s6386_s6] sm:$0xff]  }
 0xadf   : > { %v2775_v10 = vmul.f32 %v6006_v2, %v2757_v8  ;;  %v2787_v33 = vpack.c.bf16 %v6070_v21, %v6068_v20  ;;  %v6081_v40 = vadd.f32 %v2774_v24, %v2734_v23  ;;  %v5174_v24 = vld [vmem:[%s5512_s23 + $0x10] sm:$0xff]   ;;  %v5176_v8 = vld [vmem:[%s6387_s7 + $0x8] sm:$0xff]  }
 0xae0   : > { %v2759_v34 = vpop.permute.xlu1 %2758  ;;  %v5179_v23 = vld [vmem:[%s6389_s9 + $0x8] sm:$0xff]  }
 0xae1   : > { %v6083_v28 = vadd.f32 %v2775_v10, %v2735_v54  ;;  %v2776_v38 = vmul.f32 %v5998_v36, %v2759_v34  ;;  %2796 = vrot.lane.b32.xlu0 %v2787_v33, %s5258_s28 }
 0xae2   : > { %v2761_v13 = vpop.permute.xlu0 %2760 }
 0xae3   : > { %v2777_v31 = vmul.f32 %v6004_v1, %v2761_v13  ;;  %v2788_v2 = vpack.c.bf16 %v6083_v28, %v6081_v40  ;;  %v6092_v47 = vadd.f32 %v2776_v38, %v2736_v25 }
 0xae5   : > { %v6094_v43 = vadd.f32 %v2777_v31, %v2737_v29  ;;  %2798 = vrot.lane.b32.xlu1 %v2788_v2, %s5258_s28 }
 0xae7   : > { %v2789_v36 = vpack.c.bf16 %v6094_v43, %v6092_v47 }
 0xae9   : > { %2800 = vrot.lane.b32.xlu0 %v2789_v36, %s5258_s28 }
 0xb4f   : > { %v6100_v45 = vpop.permute.xlu1 %2794 }
 0xb50   : > { %4771 = vmatprep.mubr.msk.bf16.mxu1 %vm739_vm0, %v6100_v45 }
 0xb53   : > { %v6104_v58 = vpop.permute.xlu0 %2796 }
 0xb54   : > { %4772 = vmatmul.mubr.msk.bf16.vlgmr.msra.gmra.mrb[52].mxu1 %vm739_vm0, %v6104_v58 }
 0xb57   : > { %v6108_v46 = vpop.permute.xlu1 %2798 }
 0xb58   : > { %4775 = vmatprep.mubr.msk.bf16.mxu1 %vm739_vm0, %v6108_v46 }
 0xb5b   : > { %v6112_v1 = vpop.permute.xlu0 %2800 }
 0xb5c   : > { %4776 = vmatmul.mubr.msk.bf16.gmra.mrb[56].mxu1 %vm739_vm0, %v6112_v1 }
 0xb5d   : > { %4793 = vmatprep.mubr.msk.bf16.mxu1 %vm5257_vm1, %v5256_v14 }
 0xc27   : > { %v4773_v26 = vpop.f32.mrb[52].mxu1 }
 0xc28   : > { %v2848_v48 = vpop.f32.mrb[53].mxu1  ;;  %v2857_v51 = vadd.f32 %v5164_v41, %v4773_v26 }
 0xc29   : > { %v4774_v49 = vpop.f32.mrb[54].mxu1  ;;  %v2849_v9 = vadd.f32 %v5164_v41, %v2848_v48 }
 0xc2a   : > { %v2860_v62 = vadd.f32 %v5164_v41, %v4774_v49  ;;  %v2851_v37 = vpop.f32.mrb[55].mxu1 }
 0xc2b   : > { %v2852_v55 = vadd.f32 %v5164_v41, %v2851_v37 }
 0xc2c   : > { %v2880_v30 = vpack.c.bf16 %v2860_v62, %v2857_v51 }
 0xc2d   : > { %v2879_v0 = vpack.c.bf16 %v2852_v55, %v2849_v9 }
 0xc2e   : > { %3093 = vrot.lane.b32.xlu0 %v2880_v30, %s5258_s28 }
 0xc2f   : > { %3048 = vrot.lane.b32.xlu1 %v2879_v0, %s5258_s28  ;;  %v4777_v42 = vpop.f32.mrb[56].mxu1  ;;  %4780 = vmatpush3.bf16.msra.mxu0 %v2879_v0 }
 0xc30   : > { %v2864_v12 = vpop.f32.mrb[57].mxu1  ;;  %4785 = vmatprep.subr.bf16.mxu0 %v5256_v14  ;;  %v2873_v44 = vadd.f32 %v5164_v41, %v4777_v42 }
 0xc31   : > { %v4778_v11 = vpop.f32.mrb[58].mxu1  ;;  %v2865_v56 = vadd.f32 %v5164_v41, %v2864_v12 }
 0xc32   : > { %v2876_v3 = vadd.f32 %v5164_v41, %v4778_v11  ;;  %v2867_v5 = vpop.f32.mrb[59].mxu1  ;;  %4782 = vmatmul.mubr.msk.bf16.vlgmr.msra.gmra.mrb[76].mxu0 %vm826_vm2, %v5165_v53 }
 0xc33   : > { %v2868_v6 = vadd.f32 %v5164_v41, %v2867_v5  ;;  %4786 = vmatpush3.bf16.msra.mxu0 %v2880_v30  ;;  %4787 = vmatprep.mubr.msk.bf16.mxu0 %vm5257_vm1, %v5256_v14 }
 0xc34   : > { %v2882_v52 = vpack.c.bf16 %v2876_v3, %v2873_v44  ;;  %4797 = vmatprep.subr.bf16.mxu0 %v5256_v14 }
 0xc35   : > { %v2881_v7 = vpack.c.bf16 %v2868_v6, %v2865_v56  ;;  %v5180_v56 = vld [vmem:[%s6386_s6 + $0x8] sm:$0xff]  }
 0xc36   : > { %3183 = vrot.lane.b32.xlu0 %v2882_v52, %s5258_s28 }
 0xc37   : > { %3138 = vrot.lane.b32.xlu1 %v2881_v7, %s5258_s28  ;;  %4792 = vmatpush3.bf16.msra.mxu1 %v2881_v7 }
 0xc38   : > { %4803 = vmatprep.subr.bf16.mxu1 %v5256_v14 }
 0xc3a   : > { %4788 = vmatmul.mubr.msk.bf16.vlgmr.msra.gmra.mrb[80].mxu0 %vm826_vm2, %v5166_v59  ;;  %3528 = vrot.lane.b32.xlu0 %v6058_v17, %s5258_s28 }
 0xc3b   : > { %4798 = vmatpush3.bf16.msra.mxu0 %v2882_v52  ;;  %3526 = vrot.lane.b32.xlu1 %v6056_v61, %s5258_s28 }
 0xc3c   : > { %4799 = vmatprep.mubr.msk.bf16.mxu0 %vm5257_vm1, %v5256_v14  ;;  %4794 = vmatmul.mubr.msk.bf16.vlgmr.msra.gmra.mrb[60].mxu1 %vm826_vm2, %v5167_v60 }
 0xc3d   : > { %4809 = vmatprep.subr.bf16.mxu0 %v5256_v14  ;;  %4805 = vmatprep.mubr.msk.bf16.mxu1 %vm5257_vm1, %v5256_v14 }
 0xc3e   : > { %3532 = vrot.lane.b32.xlu0 %v6070_v21, %s5258_s28 }
 0xc3f   : > { %3530 = vrot.lane.b32.xlu1 %v6068_v20, %s5258_s28 }
 0xc42   : > { %3536 = vrot.lane.b32.xlu0 %v6083_v28, %s5258_s28  ;;  %4800 = vmatmul.mubr.msk.bf16.vlgmr.msra.gmra.mrb[84].mxu0 %vm826_vm2, %v5168_v19 }
 0xc43   : > { %3534 = vrot.lane.b32.xlu1 %v6081_v40, %s5258_s28  ;;  %4811 = vmatprep.mubr.msk.bf16.mxu0 %vm5257_vm1, %v5256_v14 }
 0xc46   : > { %3540 = vrot.lane.b32.xlu0 %v6094_v43, %s5258_s28 }
 0xc47   : > { %3538 = vrot.lane.b32.xlu1 %v6092_v47, %s5258_s28 }
 0xca0   : > { %v3094_v15 = vpop.permute.xlu0 %3093 }
 0xca1   : > { %v3049_v16 = vpop.permute.xlu1 %3048  ;;  %4810 = vmatpush3.bf16.msra.mxu0 %v3094_v15 }
 0xca2   : > { %4804 = vmatpush3.bf16.msra.mxu1 %v3049_v16  ;;  %4821 = vmatprep.subr.bf16.mxu0 %v5256_v14 }
 0xca3   : > { %4815 = vmatprep.subr.bf16.mxu1 %v5256_v14 }
 0xca4   : > { %4812 = vmatmul.mubr.msk.bf16.vlgmr.msra.gmra.mrb[88].mxu0 %vm826_vm2, %v5169_v22 }
 0xca5   : > { %4806 = vmatmul.mubr.msk.bf16.vlgmr.msra.gmra.mrb[64].mxu1 %vm826_vm2, %v5170_v32  ;;  %4823 = vmatprep.mubr.msk.bf16.mxu0 %vm5257_vm1, %v5256_v14 }
 0xca6   : > { %4817 = vmatprep.mubr.msk.bf16.mxu1 %vm5257_vm1, %v5256_v14  ;;  %v5175_v14 = vld [vmem:[%s6388_s8 + $0x8] sm:$0xff]  }
 0xca8   : > { %v3184_v18 = vpop.permute.xlu0 %3183 }
 0xca9   : > { %v3139_v35 = vpop.permute.xlu1 %3138  ;;  %4822 = vmatpush3.bf16.msra.mxu0 %v3184_v18 }
 0xcaa   : > { %4816 = vmatpush3.bf16.msra.mxu1 %v3139_v35  ;;  %4851 = vmatprep.subr.bf16.mxu0 %v5171_v57 }
 0xcab   : > { %4827 = vmatprep.subr.bf16.mxu1 %v5172_v39 }
 0xcac   : > { %4824 = vmatmul.mubr.msk.bf16.vlgmr.msra.gmra.mrb[92].mxu0 %vm826_vm2, %v5173_v63 }
 0xcad   : > { %4818 = vmatmul.mubr.msk.bf16.vlgmr.msra.gmra.mrb[68].mxu1 %vm826_vm2, %v5174_v24  ;;  %4852 = vmatpush3.bf16.msra.mxu0 %v5171_v57 }
 0xcae   : > { %4855 = vmatprep.mubr.msk.bf16.mxu0 %vm739_vm0, %v6100_v45  ;;  %4853 = vmatprep.subr.bf16.mxu0 %v5175_v14 }
 0xcaf   : > { %4828 = vmatpush3.bf16.msra.mxu1 %v5172_v39 }
 0xcb0   : > { %4829 = vmatprep.subr.bf16.mxu1 %v5176_v8 }
 0xcb1   : > { %4854 = vmatpush3.bf16.msra.mxu0 %v5175_v14 }
 0xcb2   : > { %4863 = vmatprep.subr.bf16.mxu0 %v5177_v4 }
 0xcb3   : > { %4830 = vmatpush3.bf16.msra.mxu1 %v5176_v8 }
 0xcb4   : > { %4856 = vmatmul.mubr.msk.bf16.vlgmr.msra.gmra.mrb[96].mxu0 %vm739_vm0, %v6104_v58  ;;  %4839 = vmatprep.subr.bf16.mxu1 %v5178_v27 }
 0xcb5   : > { %4859 = vmatprep.mubr.msk.bf16.mxu0 %vm739_vm0, %v6108_v46  ;;  %4864 = vmatpush3.bf16.msra.mxu0 %v5177_v4 }
 0xcb6   : > { %4865 = vmatprep.subr.bf16.mxu0 %v5179_v23 }
 0xcb9   : > { %4866 = vmatpush3.bf16.msra.mxu0 %v5179_v23  ;;  %v5181_v23 = vld [vmem:[#allocation2] ss:$0 sm:$0xff] }
 0xcbc   : > { %4860 = vmatmul.mubr.msk.bf16.gmra.mrb[100].mxu0 %vm739_vm0, %v6112_v1 }
 0xd05   : > { %v2917_v54 = vpop.f32.mrb[76].mxu0 }
 0xd06   : > { %v4783_v10 = vpop.f32.mrb[77].mxu0 }
 0xd07   : > { %v2920_v33 = vpop.f32.mrb[78].mxu0 }
 0xd08   : > { %v3227_v34 = vpack.c.bf16 %v2920_v33, %v2917_v54  ;;  %v4784_v38 = vpop.f32.mrb[79].mxu0 }
 0xd0d   : > { %v2958_v13 = vpop.f32.mrb[80].mxu0 }
 0xd0e   : > { %v4789_v25 = vpop.f32.mrb[81].mxu0 }
 0xd0f   : > { %v2961_v29 = vpop.f32.mrb[82].mxu0  ;;  %v2999_v31 = vpop.f32.mrb[60].mxu1 }
 0xd10   : > { %v3228_v2 = vpack.c.bf16 %v2961_v29, %v2958_v13  ;;  %v4790_v36 = vpop.f32.mrb[83].mxu0  ;;  %v4795_v45 = vpop.f32.mrb[61].mxu1 }
 0xd11   : > { %v3002_v58 = vpop.f32.mrb[62].mxu1 }
 0xd12   : > { %v3229_v46 = vpack.c.bf16 %v3002_v58, %v2999_v31  ;;  %v4796_v26 = vpop.f32.mrb[63].mxu1 }
 0xd15   : > { %v3040_v48 = vpop.f32.mrb[84].mxu0 }
 0xd16   : > { %v4801_v49 = vpop.f32.mrb[85].mxu0 }
 0xd17   : > { %v3043_v41 = vpop.f32.mrb[86].mxu0 }
 0xd18   : > { %v3230_v51 = vpack.c.bf16 %v3043_v41, %v3040_v48  ;;  %v4802_v1 = vpop.f32.mrb[87].mxu0 }
 0xd77   : > { %v3130_v62 = vpop.f32.mrb[88].mxu0 }
 0xd78   : > { %v3085_v37 = vpop.f32.mrb[64].mxu1  ;;  %v4813_v9 = vpop.f32.mrb[89].mxu0 }
 0xd79   : > { %v4807_v55 = vpop.f32.mrb[65].mxu1  ;;  %v3133_v30 = vpop.f32.mrb[90].mxu0 }
 0xd7a   : > { %v3088_v0 = vpop.f32.mrb[66].mxu1  ;;  %v3232_v42 = vpack.c.bf16 %v3133_v30, %v3130_v62  ;;  %v4814_v12 = vpop.f32.mrb[91].mxu0 }
 0xd7b   : > { %v3231_v11 = vpack.c.bf16 %v3088_v0, %v3085_v37  ;;  %v4808_v44 = vpop.f32.mrb[67].mxu1 }
 0xd7d   : > { %4831 = vmatprep.mubr.msk.bf16.mxu1 %vm739_vm0, %v3231_v11 }
 0xd7e   : > { %4832 = vmatmul.mubr.msk.bf16.vlgmr.msra.gmra.mrb[72].mxu1 %vm739_vm0, %v3232_v42 }
 0xd7f   : > { %v3220_v3 = vpop.f32.mrb[92].mxu0  ;;  %4840 = vmatpush3.bf16.msra.mxu1 %v5178_v27 }
 0xd80   : > { %v3175_v5 = vpop.f32.mrb[68].mxu1  ;;  %v4825_v53 = vpop.f32.mrb[93].mxu0  ;;  %4841 = vmatprep.subr.bf16.mxu1 %v5180_v56 }
 0xd81   : > { %v4819_v6 = vpop.f32.mrb[69].mxu1  ;;  %v3223_v52 = vpop.f32.mrb[94].mxu0 }
 0xd82   : > { %v3178_v7 = vpop.f32.mrb[70].mxu1  ;;  %v3234_v59 = vpack.c.bf16 %v3223_v52, %v3220_v3  ;;  %v4826_v60 = vpop.f32.mrb[95].mxu0 }
 0xd83   : > { %v3233_v19 = vpack.c.bf16 %v3178_v7, %v3175_v5  ;;  %v4820_v15 = vpop.f32.mrb[71].mxu1  ;;  %4842 = vmatpush3.bf16.msra.mxu1 %v5180_v56  ;;  %v3529_v52 = vpop.permute.xlu0 %3528 }
 0xd84   : > { %v3527_v7 = vpop.permute.xlu1 %3526 }
 0xd85   : > { %4835 = vmatprep.mubr.msk.bf16.mxu1 %vm739_vm0, %v3233_v19 }
 0xd86   : > { %4836 = vmatmul.mubr.msk.bf16.gmra.mrb[76].mxu1 %vm739_vm0, %v3234_v59 }
 0xd87   : > { %4843 = vmatprep.mubr.msk.bf16.mxu1 %vm739_vm0, %v3227_v34  ;;  %v4857_v16 = vpop.f32.mrb[96].mxu0 }
 0xd88   : > { %v3423_v22 = vpop.f32.mrb[97].mxu0 }
 0xd89   : > { %v4858_v32 = vpop.f32.mrb[98].mxu0 }
 0xd8a   : > { %v3426_v18 = vpop.f32.mrb[99].mxu0 }
 0xd8e   : > { %4844 = vmatmul.mubr.msk.bf16.vlgmr.msra.gmra.mrb[72].mxu1 %vm739_vm0, %v3228_v2 }
 0xd8f   : > { %4847 = vmatprep.mubr.msk.bf16.mxu1 %vm739_vm0, %v3229_v46  ;;  %v4861_v35 = vpop.f32.mrb[100].mxu0 }
 0xd90   : > { %v3439_v57 = vpop.f32.mrb[101].mxu0 }
 0xd91   : > { %v4862_v39 = vpop.f32.mrb[102].mxu0 }
 0xd92   : > { %v3442_v63 = vpop.f32.mrb[103].mxu0 }
 0xd96   : > { %4848 = vmatmul.mubr.msk.bf16.gmra.mrb[76].mxu1 %vm739_vm0, %v3230_v51 }
 0xe61   : > { %v6215_v24 = vpop.f32.mrb[72].mxu1 }
 0xe62   : > { %v3456_v14 = vadd.f32 %v4857_v16, %v6215_v24  ;;  %v6218_v8 = vpop.f32.mrb[73].mxu1 }
 0xe63   : > { %v3454_v4 = vadd.f32 %v3423_v22, %v6218_v8  ;;  %v6221_v27 = vpop.f32.mrb[74].mxu1 }
 0xe64   : > { %v3464_v54 = vadd.f32 %v5181_v23, %v3456_v14  ;;  %v3457_v10 = vadd.f32 %v4858_v32, %v6221_v27  ;;  %v6224_v33 = vpop.f32.mrb[75].mxu1  ;;  %v3533_v32 = vpop.permute.xlu0 %3532 }
 0xe65   : > { %v3462_v34 = vadd.f32 %v5181_v23, %v3454_v4  ;;  %v3455_v38 = vadd.f32 %v3426_v18, %v6224_v33 }
 0xe66   : > { %v4360_v13 = vmul.f32 -1.442695, %v3464_v54  ;;  %v3465_v25 = vadd.f32 %v5181_v23, %v3457_v10 }
 0xe67   : > { %v4358_v29 = vmul.f32 -1.442695, %v3462_v34  ;;  %v3463_v31 = vadd.f32 %v5181_v23, %v3455_v38 }
 0xe68   : > { %5098 = vpow2.f32 %v4360_v13  ;;  %v4361_v2 = vmul.f32 -1.442695, %v3465_v25  ;;  %v3537_v54 = vpop.permute.xlu0 %3536 }
 0xe69   : > { %5100 = vpow2.f32 %v4358_v29  ;;  %v4359_v36 = vmul.f32 -1.442695, %v3463_v31  ;;  %v6227_v45 = vpop.f32.mrb[76].mxu1 }
 0xe6a   : > { %5102 = vpow2.f32 %v4361_v2  ;;  %v3460_v58 = vadd.f32 %v4861_v35, %v6227_v45  ;;  %v6230_v46 = vpop.f32.mrb[77].mxu1 }
 0xe6b   : > { %5104 = vpow2.f32 %v4359_v36  ;;  %v3458_v26 = vadd.f32 %v3439_v57, %v6230_v46  ;;  %v6233_v48 = vpop.f32.mrb[78].mxu1 }
 0xe6c   : > { %v3468_v49 = vadd.f32 %v5181_v23, %v3460_v58  ;;  %v3461_v41 = vadd.f32 %v4862_v39, %v6233_v48  ;;  %v6236_v51 = vpop.f32.mrb[79].mxu1  ;;  %v3531_v39 = vpop.permute.xlu1 %3530 }
 0xe6d   : > { %v3466_v1 = vadd.f32 %v5181_v23, %v3458_v26  ;;  %v3459_v62 = vadd.f32 %v3442_v63, %v6236_v51  ;;  %v3541_v58 = vpop.permute.xlu0 %3540 }
 0xe6e   : > { %v4364_v37 = vmul.f32 -1.442695, %v3468_v49  ;;  %v3469_v9 = vadd.f32 %v5181_v23, %v3461_v41 }
 0xe6f   : > { %v4362_v55 = vmul.f32 -1.442695, %v3466_v1  ;;  %v3467_v30 = vadd.f32 %v5181_v23, %v3459_v62 }
 0xe70   : > { %5106 = vpow2.f32 %v4364_v37  ;;  %v4365_v0 = vmul.f32 -1.442695, %v3469_v9  ;;  %v3535_v13 = vpop.permute.xlu1 %3534 }
 0xe71   : > { %5108 = vpow2.f32 %v4362_v55  ;;  %v4363_v42 = vmul.f32 -1.442695, %v3467_v30 }
 0xe72   : > { %v5099_v12 = vpop.eup %5098  ;;  %5110 = vpow2.f32 %v4365_v0 }
 0xe73   : > { %v5101_v11 = vpop.eup %5100  ;;  %v3496_v44 = vadd.f32 1.0, %v5099_v12  ;;  %5112 = vpow2.f32 %v4363_v42 }
 0xe74   : > { %v5103_v3 = vpop.eup %5102  ;;  %v3494_v5 = vadd.f32 1.0, %v5101_v11  ;;  %v3539_v41 = vpop.permute.xlu1 %3538 }
 0xe75   : > { %v5105_v53 = vpop.eup %5104  ;;  %5114 = vrcp.f32 %v3496_v44  ;;  %v3497_v56 = vadd.f32 1.0, %v5103_v3 }
 0xe76   : > { %5116 = vrcp.f32 %v3494_v5  ;;  %v3495_v6 = vadd.f32 1.0, %v5105_v53 }
 0xe77   : > { %5118 = vrcp.f32 %v3497_v56 }
 0xe78   : > { %5120 = vrcp.f32 %v3495_v6 }
 0xe7a   : > { %v5107_v59 = vpop.eup %5106 }
 0xe7b   : > { %v5109_v60 = vpop.eup %5108  ;;  %v3500_v19 = vadd.f32 1.0, %v5107_v59 }
 0xe7c   : > { %v5111_v15 = vpop.eup %5110  ;;  %v3498_v16 = vadd.f32 1.0, %v5109_v60 }
 0xe7d   : > { %v5113_v22 = vpop.eup %5112  ;;  %5122 = vrcp.f32 %v3500_v19  ;;  %v3501_v18 = vadd.f32 1.0, %v5111_v15 }
 0xe7e   : > { %5124 = vrcp.f32 %v3498_v16  ;;  %v3499_v35 = vadd.f32 1.0, %v5113_v22 }
 0xe7f   : > { %v6239_v57 = vpop.eup %5114  ;;  %5126 = vrcp.f32 %v3501_v18 }
 0xe80   : > { %v6241_v63 = vpop.eup %5116  ;;  %5128 = vrcp.f32 %v3499_v35  ;;  %v3552_v38 = vmul.f32 %v6239_v57, %v3531_v39 }
 0xe81   : > { %v6243_v14 = vpop.eup %5118  ;;  %v3550_v10 = vmul.f32 %v6241_v63, %v3527_v7 }
 0xe82   : > { %v6245_v4 = vpop.eup %5120  ;;  %v3553_v23 = vmul.f32 %v6243_v14, %v3533_v32 }
 0xe83   : > { %v3551_v34 = vmul.f32 %v6245_v4, %v3529_v52 }
 0xe84   : > { %v3559_v29 = vpack.c.bf16 %v3553_v23, %v3552_v38 }
 0xe85   : > { %v3558_v25 = vpack.c.bf16 %v3551_v34, %v3550_v10 }
 0xe87   : > { %v6251_v31 = vpop.eup %5122  ;;  %4867 = vmatprep.mubr.msk.bf16.mxu0 %vm739_vm0, %v3558_v25 }
 0xe88   : > { %v6254_v2 = vpop.eup %5124  ;;  %4868 = vmatmul.mubr.msk.bf16.vlgmr.msra.gmra.mrb[104].mxu0 %vm739_vm0, %v3559_v29  ;;  %v3556_v37 = vmul.f32 %v6251_v31, %v3539_v41  ;;  %v4995_v41 = vld [vmem:[%s642_s29 + $0x8] sm:$0xff]  }
 0xe89   : > { %v6257_v36 = vpop.eup %5126  ;;  %v3554_v1 = vmul.f32 %v6254_v2, %v3535_v13 }
 0xe8a   : > { %v6259_v26 = vpop.eup %5128  ;;  %v3557_v49 = vmul.f32 %v6257_v36, %v3541_v58 }
 0xe8b   : > { %v3555_v62 = vmul.f32 %v6259_v26, %v3537_v54 }
 0xe8c   : > { %v3561_v55 = vpack.c.bf16 %v3557_v49, %v3556_v37  ;;  %v4994_v49 = vld [vmem:[%s642_s29] sm:$0xff]  }
 0xe8d   : > { %v3560_v9 = vpack.c.bf16 %v3555_v62, %v3554_v1  ;;  %4877 = vmatprep.mubr.msk.bf16.mxu1 %vm3788_vm4, %v4994_v49  ;;  %v4997_v62 = vld [vmem:[%s642_s29 + $0x10] sm:$0xff]  }
 0xe8f   : > { %4871 = vmatprep.mubr.msk.bf16.mxu0 %vm739_vm0, %v3560_v9  ;;  %v4998_v9 = vld [vmem:[%s642_s29 + $0x18] sm:$0xff]  }
 0xe90   : > { %4872 = vmatmul.mubr.msk.bf16.gmra.mrb[108].mxu0 %vm739_vm0, %v3561_v55  ;;  %v4999_v55 = vld [vmem:[%s6392_s12 + $0x8] sm:$0xff]  }
 0xf5b   : > { %v4869_v30 = vpop.f32.mrb[104].mxu0 }
 0xf5c   : > { %v3608_v0 = vpop.f32.mrb[105].mxu0 }
 0xf5d   : > { %3647 = vrot.lane.b32.xlu1 %v3608_v0, %s5259_s27  ;;  %v4870_v42 = vpop.f32.mrb[106].mxu0  ;;  %v3696_v0 = vsub.f32 1.0, %v6245_v4 }
 0xf5e   : > { %v3611_v12 = vpop.f32.mrb[107].mxu0 }
 0xf5f   : > { %3649 = vrot.lane.b32.xlu0 %v3611_v12, %s5259_s27 }
 0xf61   : > { %3651 = vrot.lane.b32.xlu1 %v4869_v30, %s5259_s27  ;;  %v3695_v30 = vsub.f32 1.0, %v6241_v63 }
 0xf63   : > { %3653 = vrot.lane.b32.xlu0 %v4870_v42, %s5259_s27  ;;  %v4873_v11 = vpop.f32.mrb[108].mxu0 }
 0xf64   : > { %v3624_v44 = vpop.f32.mrb[109].mxu0 }
 0xf65   : > { %3655 = vrot.lane.b32.xlu1 %v3624_v44, %s5259_s27  ;;  %v4874_v3 = vpop.f32.mrb[110].mxu0  ;;  %v3697_v44 = vsub.f32 1.0, %v6239_v57 }
 0xf66   : > { %v3627_v5 = vpop.f32.mrb[111].mxu0 }
 0xf67   : > { %3657 = vrot.lane.b32.xlu0 %v3627_v5, %s5259_s27  ;;  %v3703_v5 = vmul.f32 %v3695_v30, %v6056_v61  ;;  %v3700_v61 = vsub.f32 1.0, %v6259_v26 }
 0xf69   : > { %3659 = vrot.lane.b32.xlu1 %v4873_v11, %s5259_s27 }
 0xf6b   : > { %3661 = vrot.lane.b32.xlu0 %v4874_v3, %s5259_s27  ;;  %v3698_v3 = vsub.f32 1.0, %v6243_v14 }
 0xfcf   : > { %v3648_v53 = vpop.permute.xlu1 %3647 }
 0xfd0   : > { %v3671_v56 = vadd.f32 %v3648_v53, %v6218_v8  ;;  %v3704_v53 = vmul.f32 %v3696_v0, %v6058_v17 }
 0xfd1   : > { %v3650_v6 = vpop.permute.xlu0 %3649 }
 0xfd2   : > { %v3679_v52 = vadd.f32 %v3671_v56, %v5762_v50  ;;  %v3672_v7 = vadd.f32 %v3650_v6, %v6224_v33 }
 0xfd3   : > { %v3652_v59 = vpop.permute.xlu1 %3651 }
 0xfd4   : > { %5130 = vtanh.f32 %v3679_v52  ;;  %v3680_v60 = vadd.f32 %v3672_v7, %v5762_v50  ;;  %v3673_v19 = vadd.f32 %v6215_v24, %v3652_v59 }
 0xfd5   : > { %v3654_v15 = vpop.permute.xlu0 %3653 }
 0xfd6   : > { %5132 = vtanh.f32 %v3680_v60  ;;  %v3681_v16 = vadd.f32 %v3673_v19, %v5762_v50  ;;  %v3674_v22 = vadd.f32 %v6221_v27, %v3654_v15  ;;  %v3705_v60 = vmul.f32 %v3697_v44, %v6068_v20 }
 0xfd7   : > { %v3656_v32 = vpop.permute.xlu1 %3655  ;;  %v3701_v20 = vsub.f32 1.0, %v6251_v31 }
 0xfd8   : > { %5134 = vtanh.f32 %v3681_v16  ;;  %v3682_v8 = vadd.f32 %v3674_v22, %v5762_v50  ;;  %v3675_v18 = vadd.f32 %v3656_v32, %v6230_v46  ;;  %v3699_v16 = vsub.f32 1.0, %v6254_v2 }
 0xfd9   : > { %v3658_v35 = vpop.permute.xlu0 %3657 }
 0xfda   : > { %5136 = vtanh.f32 %v3682_v8  ;;  %v3683_v33 = vadd.f32 %v3675_v18, %v5762_v50  ;;  %v3676_v39 = vadd.f32 %v3658_v35, %v6236_v51  ;;  %v3707_v18 = vmul.f32 %v3699_v16, %v6081_v40 }
 0xfdb   : > { %v3660_v23 = vpop.permute.xlu1 %3659 }
 0xfdc   : > { %5138 = vtanh.f32 %v3683_v33  ;;  %v3684_v24 = vadd.f32 %v3676_v39, %v5762_v50  ;;  %v3677_v54 = vadd.f32 %v6227_v45, %v3660_v23 }
 0xfdd   : > { %v3662_v10 = vpop.permute.xlu0 %3661 }
 0xfde   : > { %v5131_v27 = vpop.eup %5130  ;;  %5140 = vtanh.f32 %v3684_v24  ;;  %v3685_v34 = vadd.f32 %v3677_v54, %v5762_v50  ;;  %v3678_v46 = vadd.f32 %v6233_v48, %v3662_v10  ;;  %v3767_v48 = vld [vmem:[%s6393_s13] sm:$0xf]  ;;  %v3709_v10 = vmul.f32 %v3701_v20, %v6092_v47 }
 0xfdf   : > { %3719 = vrot.lane.b32.xlu1 %v5131_v27, %s5258_s28  ;;  %4941 = vmatprep.subr.msk.bf16.mxu1 %vm3801_vm3, %v3767_v48  ;;  %v3803_v29 = vsel %vm3801_vm3, %v3767_v48, 0 }
 0xfe0   : > { %v5133_v38 = vpop.eup %5132  ;;  %5142 = vtanh.f32 %v3685_v34  ;;  %v3686_v51 = vadd.f32 %v3678_v46, %v5762_v50  ;;  %v4996_v50 = vld [vmem:[%s6392_s12] sm:$0xff]   ;;  %4876 = vmatpush3.bf16.msra.mxu1 %v3803_v29 }
 0xfe1   : > { %3721 = vrot.lane.b32.xlu0 %v5133_v38, %s5258_s28  ;;  %4885 = vmatprep.subr.bf16.mxu1 %v4996_v50 }
 0xfe2   : > { %v5135_v13 = vpop.eup %5134  ;;  %5144 = vtanh.f32 %v3686_v51 }
 0xfe3   : > { %3723 = vrot.lane.b32.xlu1 %v5135_v13, %s5258_s28  ;;  %4878 = vmatmul.mubr.msk.bf16.vlgmr.msra.gmra.mrb[80].mxu1 %vm3788_vm4, %v4995_v41  ;;  %v4384_v13 = vld [vmem:[%s6394_s14] ss:$0 sm:$0xff] }
 0xfe4   : > { %v5137_v45 = vpop.eup %5136  ;;  %4886 = vmatpush3.bf16.msra.mxu1 %v4996_v50  ;;  %4881 = vmatprep.mubr.msk.bf16.mxu1 %vm3788_vm4, %v4997_v62 }
 0xfe5   : > { %3725 = vrot.lane.b32.xlu0 %v5137_v45, %s5258_s28  ;;  %4887 = vmatprep.subr.bf16.mxu1 %v4999_v55 }
 0xfe6   : > { %v5139_v25 = vpop.eup %5138 }
 0xfe7   : > { %3727 = vrot.lane.b32.xlu1 %v5139_v25, %s5258_s28 }
 0xfe8   : > { %v5141_v58 = vpop.eup %5140  ;;  %4888 = vmatpush3.bf16.msra.mxu1 %v4999_v55 }
 0xfe9   : > { %3729 = vrot.lane.b32.xlu0 %v5141_v58, %s5258_s28 }
 0xfea   : > { %v5143_v1 = vpop.eup %5142 }
 0xfeb   : > { %3731 = vrot.lane.b32.xlu1 %v5143_v1, %s5258_s28  ;;  %4882 = vmatmul.mubr.msk.bf16.gmra.mrb[84].mxu1 %vm3788_vm4, %v4998_v9 }
 0xfec   : > { %v5145_v37 = vpop.eup %5144 }
 0xfed   : > { %3733 = vrot.lane.b32.xlu0 %v5145_v37, %s5258_s28 }
0x1051   : > { %v3720_v42 = vpop.permute.xlu1 %3719 }
0x1052   : > { %v3743_v12 = vmul.f32 %v6241_v63, %v3720_v42  ;;  %v3706_v63 = vmul.f32 %v3698_v3, %v6070_v21  ;;  %v3702_v21 = vsub.f32 1.0, %v6257_v36 }
0x1053   : > { %v3722_v11 = vpop.permute.xlu0 %3721 }
0x1054   : > { %v3744_v56 = vmul.f32 %v6245_v4, %v3722_v11  ;;  %v3751_v52 = vadd.f32 %v3743_v12, %v3703_v5  ;;  %v3710_v27 = vmul.f32 %v3702_v21, %v6094_v43  ;;  %v5000_v43 = vld [vmem:[%s6395_s15] sm:$0xff]  }
0x1055   : > { %v3724_v6 = vpop.permute.xlu1 %3723  ;;  %4897 = vmatprep.subr.bf16.mxu0 %v5000_v43 }
0x1056   : > { %v3752_v7 = vadd.f32 %v3744_v56, %v3704_v53  ;;  %v3745_v59 = vmul.f32 %v6239_v57, %v3724_v6  ;;  %4898 = vmatpush3.bf16.msra.mxu0 %v5000_v43 }
0x1057   : > { %v3726_v19 = vpop.permute.xlu0 %3725 }
0x1058   : > { %v3746_v15 = vmul.f32 %v6243_v14, %v3726_v19  ;;  %v3759_v22 = vpack.c.bf16 %v3752_v7, %v3751_v52  ;;  %v3753_v32 = vadd.f32 %v3745_v59, %v3705_v60  ;;  %v3708_v14 = vmul.f32 %v3700_v61, %v6083_v28 }
0x1059   : > { %v3728_v17 = vpop.permute.xlu1 %3727 }
0x105a   : > { %v3754_v4 = vadd.f32 %v3746_v15, %v3706_v63  ;;  %v3747_v8 = vmul.f32 %v6254_v2, %v3728_v17  ;;  %3874 = vrot.lane.b32.xlu1 %v3759_v22, %s5258_s28  ;;  %v4385_v63 = vld [vmem:[%s6396_s16] ss:$0 sm:$0xff] }
0x105b   : > { %v3730_v57 = vpop.permute.xlu0 %3729 }
0x105c   : > { %v3748_v35 = vmul.f32 %v6259_v26, %v3730_v57  ;;  %v3760_v33 = vpack.c.bf16 %v3754_v4, %v3753_v32  ;;  %v3755_v23 = vadd.f32 %v3747_v8, %v3707_v18 }
0x105d   : > { %v3732_v39 = vpop.permute.xlu1 %3731 }
0x105e   : > { %v3756_v24 = vadd.f32 %v3748_v35, %v3708_v14  ;;  %v3749_v54 = vmul.f32 %v6251_v31, %v3732_v39  ;;  %3876 = vrot.lane.b32.xlu0 %v3760_v33, %s5258_s28 }
0x105f   : > { %v3734_v2 = vpop.permute.xlu0 %3733 }
0x1060   : > { %v3750_v34 = vmul.f32 %v6257_v36, %v3734_v2  ;;  %v3761_v40 = vpack.c.bf16 %v3756_v24, %v3755_v23  ;;  %v3757_v46 = vadd.f32 %v3749_v54, %v3709_v10  ;;  %v5001_v36 = vld [vmem:[%s6395_s15 + $0x8] sm:$0xff]  }
0x1061   : > { %4899 = vmatprep.subr.bf16.mxu0 %v5001_v36 }
0x1062   : > { %v3758_v28 = vadd.f32 %v3750_v34, %v3710_v27  ;;  %3878 = vrot.lane.b32.xlu1 %v3761_v40, %s5258_s28  ;;  %4900 = vmatpush3.bf16.msra.mxu0 %v5001_v36 }
0x1064   : > { %v3762_v26 = vpack.c.bf16 %v3758_v28, %v3757_v46 }
0x1066   : > { %3880 = vrot.lane.b32.xlu0 %v3762_v26, %s5258_s28 }
0x10cc   : > { %v3875_v38 = vpop.permute.xlu1 %3874 }
0x10cd   : > { %4889 = vmatprep.mubr.msk.bf16.mxu1 %vm739_vm0, %v3875_v38 }
0x10d0   : > { %v3877_v31 = vpop.permute.xlu0 %3876 }
0x10d1   : > { %4890 = vmatmul.mubr.msk.bf16.vlgmr.msra.gmra.mrb[80].mxu1 %vm739_vm0, %v3877_v31 }
0x10d4   : > { %v3879_v51 = vpop.permute.xlu1 %3878 }
0x10d5   : > { %4893 = vmatprep.mubr.msk.bf16.mxu1 %vm739_vm0, %v3879_v51 }
0x10d8   : > { %v3881_v47 = vpop.permute.xlu0 %3880 }
0x10d9   : > { %4894 = vmatmul.mubr.msk.bf16.gmra.mrb[84].mxu1 %vm739_vm0, %v3881_v47 }
0x11a4   : > { %v4891_v45 = vpop.f32.mrb[80].mxu1 }
0x11a5   : > { %v3980_v25 = vadd.f32 %v4891_v45, %v4384_v13  ;;  %v3940_v48 = vpop.f32.mrb[81].mxu1 }
0x11a6   : > { %v3978_v50 = vadd.f32 %v4384_v13, %v3940_v48  ;;  %v4892_v29 = vpop.f32.mrb[82].mxu1 }
0x11a7   : > { %5146 = vtanh.f32 %v3980_v25  ;;  %v3981_v58 = vadd.f32 %v4892_v29, %v4384_v13  ;;  %v3943_v49 = vpop.f32.mrb[83].mxu1 }
0x11a8   : > { %5148 = vtanh.f32 %v3978_v50  ;;  %v3979_v41 = vadd.f32 %v4384_v13, %v3943_v49 }
0x11a9   : > { %5150 = vtanh.f32 %v3981_v58 }
0x11aa   : > { %5152 = vtanh.f32 %v3979_v41 }
0x11ac   : > { %v4895_v1 = vpop.f32.mrb[84].mxu1 }
0x11ad   : > { %v3984_v62 = vadd.f32 %v4895_v1, %v4384_v13  ;;  %v3956_v37 = vpop.f32.mrb[85].mxu1 }
0x11ae   : > { %v3982_v9 = vadd.f32 %v4384_v13, %v3956_v37  ;;  %v4896_v55 = vpop.f32.mrb[86].mxu1 }
0x11af   : > { %5154 = vtanh.f32 %v3984_v62  ;;  %v3985_v30 = vadd.f32 %v4896_v55, %v4384_v13  ;;  %v3959_v0 = vpop.f32.mrb[87].mxu1 }
0x11b0   : > { %5156 = vtanh.f32 %v3982_v9  ;;  %v3983_v42 = vadd.f32 %v4384_v13, %v3959_v0 }
0x11b1   : > { %v5147_v12 = vpop.eup %5146  ;;  %5158 = vtanh.f32 %v3985_v30 }
0x11b2   : > { %v5149_v11 = vpop.eup %5148  ;;  %5160 = vtanh.f32 %v3983_v42 }
0x11b3   : > { %v5151_v44 = vpop.eup %5150 }
0x11b4   : > { %v5153_v3 = vpop.eup %5152  ;;  %v3995_v5 = vpack.c.bf16 %v5151_v44, %v5147_v12 }
0x11b5   : > { %v3994_v53 = vpack.c.bf16 %v5153_v3, %v5149_v11 }
0x11b7   : > { %4901 = vmatprep.mubr.msk.bf16.mxu0 %vm739_vm0, %v3994_v53 }
0x11b8   : > { %4902 = vmatmul.mubr.msk.bf16.vlgmr.msra.gmra.mrb[112].mxu0 %vm739_vm0, %v3995_v5 }
0x11b9   : > { %v5155_v56 = vpop.eup %5154 }
0x11ba   : > { %v5157_v6 = vpop.eup %5156 }
0x11bb   : > { %v5159_v52 = vpop.eup %5158 }
0x11bc   : > { %v5161_v7 = vpop.eup %5160  ;;  %v3997_v59 = vpack.c.bf16 %v5159_v52, %v5155_v56 }
0x11bd   : > { %v3996_v60 = vpack.c.bf16 %v5161_v7, %v5157_v6 }
0x11bf   : > { %4905 = vmatprep.mubr.msk.bf16.mxu0 %vm739_vm0, %v3996_v60 }
0x11c0   : > { %4906 = vmatmul.mubr.msk.bf16.gmra.mrb[116].mxu0 %vm739_vm0, %v3997_v59 }
0x128b   : > { %v4903_v19 = vpop.f32.mrb[112].mxu0 }
0x128c   : > { %v4076_v15 = vadd.f32 %v4903_v19, %v4385_v63  ;;  %v4067_v16 = vpop.f32.mrb[113].mxu0 }
0x128d   : > { %v4068_v22 = vadd.f32 %v4385_v63, %v4067_v16  ;;  %v4904_v61 = vpop.f32.mrb[114].mxu0 }
0x128e   : > { %4100 = vst.msk [vmem:[%s648_s18 + $0x10] sm:$0xff] %vm739_vm0, %v4076_v15  ;;  %v4079_v17 = vadd.f32 %v4904_v61, %v4385_v63  ;;  %v4070_v32 = vpop.f32.mrb[115].mxu0 }
0x128f   : > { %4098 = vst.msk [vmem:[%s648_s18] sm:$0xff] %vm739_vm0, %v4068_v22  ;;  %v4071_v4 = vadd.f32 %v4385_v63, %v4070_v32 }
0x1290   : > { %4101 = vst.msk [vmem:[%s648_s18 + $0x18] sm:$0xff] %vm739_vm0, %v4079_v17 }
0x1291   : > { %4099 = vst.msk [vmem:[%s648_s18 + $0x8] sm:$0xff] %vm739_vm0, %v4071_v4 }
0x1293   : > { %v4907_v8 = vpop.f32.mrb[116].mxu0 }
0x1294   : > { %v4092_v57 = vadd.f32 %v4907_v8, %v4385_v63  ;;  %v4083_v20 = vpop.f32.mrb[117].mxu0 }
0x1295   : > { %v4084_v21 = vadd.f32 %v4385_v63, %v4083_v20  ;;  %v4908_v18 = vpop.f32.mrb[118].mxu0 }
0x1296   : > { %4104 = vst.msk [vmem:[%s648_s18 + $0x30] sm:$0xff] %vm739_vm0, %v4092_v57  ;;  %v4095_v14 = vadd.f32 %v4908_v18, %v4385_v63  ;;  %v4086_v35 = vpop.f32.mrb[119].mxu0 }
0x1297   : > { %4102 = vst.msk [vmem:[%s648_s18 + $0x20] sm:$0xff] %vm739_vm0, %v4084_v21  ;;  %v4087_v33 = vadd.f32 %v4385_v63, %v4086_v35 }
0x1298   : > { %4105 = vst.msk [vmem:[%s648_s18 + $0x38] sm:$0xff] %vm739_vm0, %v4095_v14 }
0x1299   : > { %4103 = vst.msk [vmem:[%s648_s18 + $0x28] sm:$0xff] %vm739_vm0, %v4087_v33 }
0x129a PF: > { %s29_s24 = sadd.s32 1, %s5252_s24  }
0x129b   : > { %p26_p10 = scmp.ge.s32.totalorder %s29_s24, 4  }
0x129d   :  { %28 = sbr.rel (!%p26_p10) target bundleno = 5 (0x5), region = 136 }
0x12a4   :  { %4128 = vsyncpa [#allocation3], 1 }
0x12a5   :  { %4130 = vsyncpa [#allocation3 + $0x1], 1 }
0x12a6   :  { %4131 = vsyncpa [#allocation5], 1 }

</bundles_post_ra>
